<compile_context>
chip_gen: v7x
topology: tpu7x:2x2x1
jax: 0.10.0
libtpu: 0.0.40
codegen_flags: <defaults>
</compile_context>

<pallas_src>
import functools

import jax
import jax.numpy as jnp
from jax import lax
from jax.experimental import pallas as pl
from jax.experimental.pallas import tpu as pltpu

LN_EPS = 1e-5                       # torch nn.LayerNorm default


# ----------------------------- TPU sizing helpers ---------------------------

def _vmem_capacity():
    try:
        info = pltpu.get_tpu_info()
        cap = int(getattr(info, "vmem_capacity_bytes", 0)) or (64 << 20)
    except Exception:
        cap = 64 << 20
    return cap


_VMEM_CAP = _vmem_capacity()
# ~100 MiB on v5e/v6e (128 MiB phys), ~48 MiB on v7x (64 MiB phys).
_VMEM_LIMIT = max(min(int(_VMEM_CAP * 0.8), _VMEM_CAP - (16 << 20)), 32 << 20)
_VMEM_BUDGET = max(int(_VMEM_LIMIT * 0.75), 24 << 20)   # used when sizing tiles


def _cparams(*sem):
    return pltpu.CompilerParams(dimension_semantics=sem,
                                vmem_limit_bytes=_VMEM_LIMIT)


def _row_tile(n, target):
    """Largest multiple-of-8 divisor of n that is <= target (else n itself).
    If that leaves a single tile, shrink once so the 'parallel' grid axis has
    >= 2 tiles (keeps both v7x TensorCores busy)."""
    if n % 8 != 0:
        return n
    divs = [d for d in range(8, n + 1, 8) if n % d == 0]
    fit = [d for d in divs if d <= target]
    t = max(fit) if fit else min(divs)
    if t == n and len(divs) > 1:
        t = max(d for d in divs if d < n)
    return t


def _rows_for_budget(din, dout, extra_per_row=0):
    # bf16 double-buffered in/out tiles + f32 membrane scratch per row; the
    # (double-buffered) bf16 weight is the fixed cost.
    per_row = 4 * din + 12 * dout + extra_per_row
    fixed = 4 * din * dout + (2 << 20)
    avail = _VMEM_BUDGET - fixed
    if avail <= per_row * 128:
        return 128
    return int(min(2048, avail // per_row))


def _attn_batch_tile(B, L, D, heads):
    dh = max(D // heads, 1)
    per_b = L * (12 * D + 4 * D + 4 * D)          # qkv-in / out (bf16 x2) + f32 membrane
    per_b += heads * (6 * L * L + 4 * L * dh)     # per-head score / output temporaries
    cap = max(1, (_VMEM_BUDGET - (4 << 20)) // per_b)
    divs = [x for x in range(1, B + 1) if B % x == 0 and x <= cap]
    tb = max(divs) if divs else 1
    if tb == B and B > 1:                         # leave >= 2 tiles for megacore
        tb = max(x for x in range(1, B) if B % x == 0)
    return tb


# --------------------------- shared in-kernel math ---------------------------

def _ln_affine(y, g, b):
    # one-pass LayerNorm statistics (mean / mean-of-squares).
    mu = jnp.mean(y, axis=-1, keepdims=True)
    msq = jnp.mean(y * y, axis=-1, keepdims=True)
    var = msq - mu * mu
    return (y - mu) * lax.rsqrt(var + LN_EPS) * g + b


def _lif_step(y_over_tau, v_prev, decay, thr):
    # PredictiveLIF (decay_input=True, v_reset=0, predicted current == 0):
    #   v <- v*(1 - 1/tau) + y/tau ; spike = v >= thr ; hard reset to 0.
    v = v_prev * decay + y_over_tau
    sp = v >= thr
    return sp, jnp.where(sp, 0.0, v)


# ----------------------- fused Linear + LN + LIF kernels ---------------------
# Note: gamma/beta inputs are pre-divided by tau, so the LN output is already
# the per-step charge y/tau.

def _qkv_lin_ln_lif_kernel(x_ref, w_ref, b_ref, g_ref, bt_ref, o_ref, v_mem,
                           *, decay, thr, d):
    t = pl.program_id(1)

    @pl.when(t == 0)
    def _():
        v_mem[...] = jnp.zeros_like(v_mem)

    y = jnp.dot(x_ref[0], w_ref[...], preferred_element_type=jnp.float32)
    y = y + b_ref[...]                                   # [TM, 3D]
    spikes, vnews = [], []
    for s in range(3):                                   # separate LN per q/k/v
        lo = s * d
        yn = _ln_affine(y[:, lo:lo + d], g_ref[:, lo:lo + d], bt_ref[:, lo:lo + d])
        sp, vn = _lif_step(yn, v_mem[:, lo:lo + d], decay, thr)
        spikes.append(sp.astype(jnp.float32))
        vnews.append(vn)
    v_mem[...] = jnp.concatenate(vnews, axis=-1)
    o_ref[0] = jnp.concatenate(spikes, axis=-1).astype(o_ref.dtype)


def _lin_ln_lif_kernel(x_ref, w_ref, b_ref, g_ref, bt_ref, o_ref, v_mem,
                       *, decay, thr):
    t = pl.program_id(1)

    @pl.when(t == 0)
    def _():
        v_mem[...] = jnp.zeros_like(v_mem)

    y = jnp.dot(x_ref[0], w_ref[...], preferred_element_type=jnp.float32)
    yn = _ln_affine(y + b_ref[...], g_ref[...], bt_ref[...])
    sp, vn = _lif_step(yn, v_mem[...], decay, thr)
    v_mem[...] = vn
    o_ref[0] = sp.astype(o_ref.dtype)


def _lin_ln_lif_res_kernel(x_ref, w_ref, b_ref, g_ref, bt_ref, res_ref,
                           o_ref, v_mem, *, decay, thr):
    t = pl.program_id(1)

    @pl.when(t == 0)
    def _():
        v_mem[...] = jnp.zeros_like(v_mem)

    y = jnp.dot(x_ref[0], w_ref[...], preferred_element_type=jnp.float32)
    yn = _ln_affine(y + b_ref[...], g_ref[...], bt_ref[...])
    sp, vn = _lif_step(yn, v_mem[...], decay, thr)
    v_mem[...] = vn
    # residual add fused into the store (bf16 integers -> exact)
    o_ref[0] = res_ref[0] + sp.astype(o_ref.dtype)


def _lin_ln_lif_res_mean_kernel(x_ref, w_ref, b_ref, g_ref, bt_ref, res_ref,
                                o_ref, mean_ref, v_mem, *, decay, thr, inv_t):
    t = pl.program_id(1)

    @pl.when(t == 0)
    def _():
        v_mem[...] = jnp.zeros_like(v_mem)
        mean_ref[...] = jnp.zeros_like(mean_ref)

    y = jnp.dot(x_ref[0], w_ref[...], preferred_element_type=jnp.float32)
    yn = _ln_affine(y + b_ref[...], g_ref[...], bt_ref[...])
    sp, vn = _lif_step(yn, v_mem[...], decay, thr)
    v_mem[...] = vn
    out = res_ref[0].astype(jnp.float32) + sp.astype(jnp.float32)
    o_ref[0] = out.astype(o_ref.dtype)
    mean_ref[...] += out * inv_t                  # fused mean-over-T (rep input)


def qkv_linear_ln_lif(x, w, b, g, beta, *, tau, thr):
    # x: [T, M, D] bf16 -> fused q|k|v spikes [T, M, 3D] bf16.
    T, M, Din = x.shape
    D3 = w.shape[1]
    d = D3 // 3
    decay = 1.0 - 1.0 / float(tau)
    TM = _row_tile(M, _rows_for_budget(Din, D3))
    kern = functools.partial(_qkv_lin_ln_lif_kernel, decay=decay,
                             thr=float(thr), d=d)
    return pl.pallas_call(
        kern,
        out_shape=jax.ShapeDtypeStruct((T, M, D3), jnp.bfloat16),
        grid=(M // TM, T),                        # T innermost: per-tile LIF scan
        in_specs=[
            pl.BlockSpec((1, TM, Din), lambda m, t: (t, m, 0)),
            pl.BlockSpec((Din, D3), lambda m, t: (0, 0)),     # resident weight
            pl.BlockSpec((1, D3), lambda m, t: (0, 0)),
            pl.BlockSpec((1, D3), lambda m, t: (0, 0)),
            pl.BlockSpec((1, D3), lambda m, t: (0, 0)),
        ],
        out_specs=pl.BlockSpec((1, TM, D3), lambda m, t: (t, m, 0)),
        scratch_shapes=[pltpu.VMEM((TM, D3), jnp.float32)],
        compiler_params=_cparams("parallel", "arbitrary"),
    )(x.astype(jnp.bfloat16), w.astype(jnp.bfloat16),
      b.reshape(1, D3).astype(jnp.float32),
      (g / tau).reshape(1, D3).astype(jnp.float32),
      (beta / tau).reshape(1, D3).astype(jnp.float32))


def linear_ln_lif(x, w, b, g, beta, *, tau, thr, residual=None,
                  mean_over_t=False):
    # x: [T, M, Din] bf16 -> spikes (+ optional fused residual) [T, M, Dout]
    # bf16; optionally also the mean over T as an [M, Dout] f32 output.
    T, M, Din = x.shape
    Dout = w.shape[1]
    decay = 1.0 - 1.0 / float(tau)
    extra = (4 * Dout if residual is not None else 0) + (8 * Dout if mean_over_t else 0)
    TM = _row_tile(M, _rows_for_budget(Din, Dout, extra))

    in_specs = [
        pl.BlockSpec((1, TM, Din), lambda m, t: (t, m, 0)),
        pl.BlockSpec((Din, Dout), lambda m, t: (0, 0)),       # resident weight
        pl.BlockSpec((1, Dout), lambda m, t: (0, 0)),
        pl.BlockSpec((1, Dout), lambda m, t: (0, 0)),
        pl.BlockSpec((1, Dout), lambda m, t: (0, 0)),
    ]
    args = [x.astype(jnp.bfloat16), w.astype(jnp.bfloat16),
            b.reshape(1, Dout).astype(jnp.float32),
            (g / tau).reshape(1, Dout).astype(jnp.float32),
            (beta / tau).reshape(1, Dout).astype(jnp.float32)]

    out_spec = pl.BlockSpec((1, TM, Dout), lambda m, t: (t, m, 0))
    out_shape = jax.ShapeDtypeStruct((T, M, Dout), jnp.bfloat16)
    out_specs, out_shapes = out_spec, out_shape

    if residual is None:
        kern = functools.partial(_lin_ln_lif_kernel, decay=decay, thr=float(thr))
    else:
        in_specs.append(pl.BlockSpec((1, TM, Dout), lambda m, t: (t, m, 0)))
        args.append(residual.astype(jnp.bfloat16))
        if mean_over_t:
            kern = functools.partial(_lin_ln_lif_res_mean_kernel, decay=decay,
                                     thr=float(thr), inv_t=1.0 / float(T))
            out_specs = (out_spec,
                         pl.BlockSpec((TM, Dout), lambda m, t: (m, 0)))
            out_shapes = (out_shape,
                          jax.ShapeDtypeStruct((M, Dout), jnp.float32))
        else:
            kern = functools.partial(_lin_ln_lif_res_kernel, decay=decay,
                                     thr=float(thr))

    return pl.pallas_call(
        kern,
        out_shape=out_shapes,
        grid=(M // TM, T),
        in_specs=in_specs,
        out_specs=out_specs,
        scratch_shapes=[pltpu.VMEM((TM, Dout), jnp.float32)],
        compiler_params=_cparams("parallel", "arbitrary"),
    )(*args)


# ----------------------- fused spiking attention + LIF ----------------------

def _attn_lif_kernel(qkv_ref, o_ref, v_mem, *, heads, d, y_scale, decay, thr):
    t = pl.program_id(1)

    @pl.when(t == 0)
    def _():
        v_mem[...] = jnp.zeros_like(v_mem)

    qkv = qkv_ref[0]                               # [TB, L, 3D] bf16 spikes
    dh = d // heads
    outs = []
    for h in range(heads):                         # static unroll; heads = lane slices
        q = qkv[:, :, h * dh:(h + 1) * dh]
        k = qkv[:, :, d + h * dh:d + (h + 1) * dh]
        v = qkv[:, :, 2 * d + h * dh:2 * d + (h + 1) * dh]
        s = lax.dot_general(q, k, (((2,), (2,)), ((0,), (0,))),
                            preferred_element_type=jnp.float32)        # [TB, L, L]
        oh = lax.dot_general(s.astype(jnp.bfloat16), v,                # counts <= Dh -> exact
                             (((2,), (1,)), ((0,), (0,))),
                             preferred_element_type=jnp.float32)       # [TB, L, Dh]
        outs.append(oh)
    y = jnp.concatenate(outs, axis=-1)             # [TB, L, D] lane-dense

    vm = v_mem[...] * decay + y * y_scale          # qk_scale/tau folded in
    sp = vm >= thr
    v_mem[...] = jnp.where(sp, 0.0, vm)
    o_ref[0] = sp.astype(o_ref.dtype)


def spiking_attention_lif(qkv, *, heads, scale, tau, thr):
    # qkv: [T, B, L, 3D] bf16 spikes -> attn_lif spikes [T, B, L, D] bf16.
    T, B, L, D3 = qkv.shape
    D = D3 // 3
    TB = _attn_batch_tile(B, L, D, heads)
    in_spec = pl.BlockSpec((1, TB, L, D3), lambda b, t: (t, b, 0, 0))
    out_spec = pl.BlockSpec((1, TB, L, D), lambda b, t: (t, b, 0, 0))
    kern = functools.partial(_attn_lif_kernel, heads=heads, d=D,
                             y_scale=float(scale) / float(tau),
                             decay=1.0 - 1.0 / float(tau), thr=float(thr))
    return pl.pallas_call(
        kern,
        out_shape=jax.ShapeDtypeStruct((T, B, L, D), jnp.bfloat16),
        grid=(B // TB, T),                         # T innermost for the LIF scan
        in_specs=[in_spec],
        out_specs=out_spec,
        scratch_shapes=[pltpu.VMEM((TB, L, D), jnp.float32)],
        compiler_params=_cparams("parallel", "arbitrary"),
    )(qkv)


# ----------------------- plain row-tiled dense kernels ----------------------

def _linear_ln_kernel(x_ref, w_ref, b_ref, g_ref, bt_ref, o_ref):
    y = jnp.dot(x_ref[...], w_ref[...],
                preferred_element_type=jnp.float32) + b_ref[...]
    o_ref[...] = _ln_affine(y, g_ref[...], bt_ref[...])


def linear_ln(x, w, b, g, beta, *, row_tile=512):
    # transform head (kept f32: small, correctness-facing output)
    N, Din = x.shape
    Dout = w.shape[1]
    TM = _row_tile(N, row_tile)
    return pl.pallas_call(
        _linear_ln_kernel,
        out_shape=jax.ShapeDtypeStruct((N, Dout), jnp.float32),
        grid=(N // TM,),
        in_specs=[
            pl.BlockSpec((TM, Din), lambda i: (i, 0)),
            pl.BlockSpec((Din, Dout), lambda i: (0, 0)),
            pl.BlockSpec((1, Dout), lambda i: (0, 0)),
            pl.BlockSpec((1, Dout), lambda i: (0, 0)),
            pl.BlockSpec((1, Dout), lambda i: (0, 0)),
        ],
        out_specs=pl.BlockSpec((TM, Dout), lambda i: (i, 0)),
        compiler_params=_cparams("parallel"),
    )(x.astype(jnp.float32), w, b.reshape(1, Dout), g.reshape(1, Dout),
      beta.reshape(1, Dout))


def _linear_kernel(x_ref, w_ref, b_ref, o_ref):
    o_ref[...] = jnp.dot(x_ref[...], w_ref[...],
                         preferred_element_type=jnp.float32) + b_ref[...]


def linear(x, w, b, *, row_tile=512):
    N, Din = x.shape
    Dout = w.shape[1]
    TM = _row_tile(N, row_tile)
    return pl.pallas_call(
        _linear_kernel,
        out_shape=jax.ShapeDtypeStruct((N, Dout), jnp.float32),
        grid=(N // TM,),
        in_specs=[
            pl.BlockSpec((TM, Din), lambda i: (i, 0)),
            pl.BlockSpec((Din, Dout), lambda i: (0, 0)),
            pl.BlockSpec((1, Dout), lambda i: (0, 0)),
        ],
        out_specs=pl.BlockSpec((TM, Dout), lambda i: (i, 0)),
        compiler_params=_cparams("parallel"),
    )(x, w, b.reshape(1, Dout))


def _ln_kernel(x_ref, g_ref, b_ref, o_ref):
    y = x_ref[...].astype(jnp.float32)
    o_ref[...] = _ln_affine(y, g_ref[...], b_ref[...])


def layernorm(x, g, b):
    N, D = x.shape
    target = max(128, min(4096, _VMEM_BUDGET // (12 * D + 1)))
    TM = _row_tile(N, target)
    return pl.pallas_call(
        _ln_kernel,
        out_shape=jax.ShapeDtypeStruct((N, D), jnp.float32),
        grid=(N // TM,),
        in_specs=[
            pl.BlockSpec((TM, D), lambda i: (i, 0)),
            pl.BlockSpec((1, D), lambda i: (0, 0)),
            pl.BlockSpec((1, D), lambda i: (0, 0)),
        ],
        out_specs=pl.BlockSpec((TM, D), lambda i: (i, 0)),
        compiler_params=_cparams("parallel"),
    )(x, g.reshape(1, D), b.reshape(1, D))


# ------------------------------ model (glue) --------------------------------

def init_params(key, *, depths, dim, vocab_size, num_classes):
    keys = iter(jax.random.split(key, 3 + depths * 6))

    def lin(din, dout):  # nn.Linear init via _init_weights: N(0, 0.02), bias 0
        w = 0.02 * jax.random.normal(next(keys), (din, dout), jnp.float32)
        return w, jnp.zeros((dout,), jnp.float32)

    def ln(d):           # nn.LayerNorm init: weight 1, bias 0
        return jnp.ones((d,), jnp.float32), jnp.zeros((d,), jnp.float32)

    params = {}
    # nn.Embedding default init N(0, 1) (not touched by _init_weights)
    params['emb'] = jax.random.normal(next(keys), (vocab_size, dim), jnp.float32)

    hidden = dim * 4
    blocks, transforms = [], []
    for _ in range(depths):
        attn = {}
        # q/k/v projections + their LayerNorms stored fused along the out axis
        attn['qkv_w'], attn['qkv_b'] = lin(dim, 3 * dim)
        attn['qkv_g'], attn['qkv_beta'] = ln(3 * dim)
        attn['last_w'], attn['last_b'] = lin(dim, dim)
        attn['last_g'], attn['last_beta'] = ln(dim)
        m = {}
        m['fc1_w'], m['fc1_b'] = lin(dim, hidden)
        m['ln1_g'], m['ln1_b'] = ln(hidden)
        m['fc2_w'], m['fc2_b'] = lin(hidden, dim)
        m['ln2_g'], m['ln2_b'] = ln(dim)
        blocks.append({'attn': attn, 'mlp': m})

        t = {}
        t['fc_w'], t['fc_b'] = lin(dim, dim)
        t['ln_g'], t['ln_b'] = ln(dim)
        transforms.append(t)

    params['blocks'] = blocks
    params['transforms'] = transforms
    params['last_ln_g'], params['last_ln_b'] = ln(dim)
    params['cls_w'], params['cls_b'] = lin(dim, num_classes)
    return params


def attn_forward(p, x, *, heads, tau, thr, qk_scale):
    # x: [T, B, L, D] bf16 residual stream; returns x + attn(x).
    T, B, L, D = x.shape
    xt = x.reshape(T, B * L, D)

    qkv = qkv_linear_ln_lif(xt, p['qkv_w'], p['qkv_b'], p['qkv_g'],
                            p['qkv_beta'], tau=tau, thr=thr)
    a = spiking_attention_lif(qkv.reshape(T, B, L, 3 * D), heads=heads,
                              scale=qk_scale, tau=tau, thr=thr / 2.0)
    # 'last' projection + LN + LIF with the block residual fused into the store
    out = linear_ln_lif(a.reshape(T, B * L, D), p['last_w'], p['last_b'],
                        p['last_g'], p['last_beta'], tau=tau, thr=thr,
                        residual=xt)
    return out.reshape(T, B, L, D)


def mlp_forward(p, x, *, tau, thr):
    # x: [T, B, L, D]; returns (x + mlp(x), mean over T of that) — the mean is
    # accumulated inside the fc2 kernel (rep input for the transform head).
    T, B, L, D = x.shape
    xt = x.reshape(T, B * L, D)
    h = linear_ln_lif(xt, p['fc1_w'], p['fc1_b'], p['ln1_g'], p['ln1_b'],
                      tau=tau, thr=thr)
    out, rep = linear_ln_lif(h, p['fc2_w'], p['fc2_b'], p['ln2_g'], p['ln2_b'],
                             tau=tau, thr=thr, residual=xt, mean_over_t=True)
    return out.reshape(T, B, L, D), rep          # rep: [B*L, D] f32


def spikformer_forward(params, tokens, *, T, heads, tau, common_thr, qk_scale):
    B, L = tokens.shape
    D = params['emb'].shape[1]
    emb = params['emb'][tokens]                   # [B, L, D] gather (XLA glue)
    # ATan surrogate forward == heaviside; it commutes with the T-repeat, so it
    # is applied once on the embedding (tiny -> plain XLA, no kernel launch).
    x0 = (emb >= 0.0).astype(jnp.bfloat16)
    x = jnp.broadcast_to(x0[None], (T, B, L, D))  # time-major bf16 residual

    representations = []
    for bp, tp in zip(params['blocks'], params['transforms']):
        x = attn_forward(bp['attn'], x, heads=heads, tau=tau,
                         thr=common_thr, qk_scale=qk_scale)
        x, rep = mlp_forward(bp['mlp'], x, tau=tau, thr=common_thr)
        rep = linear_ln(rep, tp['fc_w'], tp['fc_b'],
                        tp['ln_g'], tp['ln_b']).reshape(B, L, D)
        representations.append(rep)

    xl = layernorm(x.reshape(T * B * L, D), params['last_ln_g'],
                   params['last_ln_b']).reshape(T, B, L, D)
    xm = jnp.mean(xl, axis=2)                     # mean over L -> [T, B, D]
    logits = linear(xm.reshape(T * B, D), params['cls_w'],
                    params['cls_b']).reshape(T, B, -1)
    return representations, jnp.transpose(logits, (1, 0, 2))   # [B, T, C]


if __name__ == "__main__":
    # small but shape-consistent config
    depths, L, tau, common_thr, D, T = 2, 8, 2.0, 1.0, 32, 2
    heads, qk_scale = 4, 0.125
    vocab_size, num_classes, B = 64, 2, 2

    key = jax.random.PRNGKey(0)
    pkey, tkey = jax.random.split(key)
    params = init_params(pkey, depths=depths, dim=D,
                         vocab_size=vocab_size, num_classes=num_classes)
    tokens = jax.random.randint(tkey, (B, L), 0, vocab_size)

    fwd = jax.jit(functools.partial(spikformer_forward, T=T, heads=heads,
                                    tau=tau, common_thr=common_thr,
                                    qk_scale=qk_scale))
    reps, logits = fwd(params, tokens)
    jax.block_until_ready(logits)
    for r in reps:
        jax.block_until_ready(r)
    assert logits.shape == (B, T, num_classes)
    assert all(r.shape == (B, L, D) for r in reps)
    print("KERNEL_OK")
</pallas_src>

<mosaic_0001>
module attributes {stable_mosaic.version = 11 : i64} {
  func.func @_attn_lif_kernel(%arg0: i32, %arg1: i32, %arg2: memref<1x1x8x96xbf16, #tpu.memory_space<vmem>>, %arg3: memref<1x1x8x32xbf16, #tpu.memory_space<vmem>>, %arg4: memref<1x8x32xf32, #tpu.memory_space<vmem>>) attributes {dimension_semantics = [#tpu.dimension_semantics<parallel>, #tpu.dimension_semantics<arbitrary>], iteration_bounds = array<i64: 2, 2>, scalar_prefetch = 0 : i64, scratch_operands = 1 : i64, tpu.core_type = #tpu.core_type<tc>, window_params = [{transform_indices = @transform_0, window_bounds = array<i64: 1, 1, 8, 96>}, {transform_indices = @transform_1, window_bounds = array<i64: 1, 1, 8, 32>}]} {
    %c0_i32 = arith.constant 0 : i32
    %0 = arith.cmpi eq, %arg1, %c0_i32 : i32
    %1 = arith.extui %0 : i1 to i32
    %c0_i32_0 = arith.constant 0 : i32
    %2 = arith.cmpi ne, %1, %c0_i32_0 : i32
    scf.if %2 {
      %cst_25 = arith.constant 0.000000e+00 : f32
      %47 = vector.broadcast %cst_25 : f32 to vector<1x8x32xf32>
      %c0_26 = arith.constant 0 : index
      %c0_27 = arith.constant 0 : index
      %c0_28 = arith.constant 0 : index
      %48 = vector.load %arg4[%c0_26, %c0_27, %c0_28] : memref<1x8x32xf32, #tpu.memory_space<vmem>>, vector<1x8x32xf32>
      tpu.vector_store %arg4[%c0_26, %c0_27, %c0_28], %47 {strides = array<i32>} : memref<1x8x32xf32, #tpu.memory_space<vmem>>, vector<1x8x32xf32>,
    } else {
    }
    %c0 = arith.constant 0 : index
    %c0_1 = arith.constant 0 : index
    %c0_2 = arith.constant 0 : index
    %c0_3 = arith.constant 0 : index
    %3 = vector.load %arg2[%c0, %c0_1, %c0_2, %c0_3] : memref<1x1x8x96xbf16, #tpu.memory_space<vmem>>, vector<1x1x8x96xbf16>
    %4 = vector.shape_cast %3 : vector<1x1x8x96xbf16> to vector<1x8x96xbf16>
    %5 = vector.extract_strided_slice %4 {offsets = [0, 0, 0], sizes = [1, 8, 8], strides = [1, 1, 1]} : vector<1x8x96xbf16> to vector<1x8x8xbf16>
    %6 = vector.extract_strided_slice %4 {offsets = [0, 0, 32], sizes = [1, 8, 8], strides = [1, 1, 1]} : vector<1x8x96xbf16> to vector<1x8x8xbf16>
    %7 = vector.extract_strided_slice %4 {offsets = [0, 0, 64], sizes = [1, 8, 8], strides = [1, 1, 1]} : vector<1x8x96xbf16> to vector<1x8x8xbf16>
    %cst = arith.constant dense<0.000000e+00> : vector<1x8x8xf32>
    %8 = tpu.matmul %5, %6, %cst {dimension_numbers = #tpu.dot_dimension_numbers<[2], [2], [1], [1], [0, 0, 0, 1, 1, 1], [0], [0]>} : vector<1x8x8xbf16>, vector<1x8x8xbf16>, vector<1x8x8xf32> -> vector<1x8x8xf32>
    %9 = arith.truncf %8 : vector<1x8x8xf32> to vector<1x8x8xbf16>
    %cst_4 = arith.constant dense<0.000000e+00> : vector<1x8x8xf32>
    %10 = tpu.matmul %9, %7, %cst_4 {dimension_numbers = #tpu.dot_dimension_numbers<[2], [1], [1], [2], [0, 0, 0, 1, 1, 2], [0], [0]>} : vector<1x8x8xbf16>, vector<1x8x8xbf16>, vector<1x8x8xf32> -> vector<1x8x8xf32>
    %11 = vector.extract_strided_slice %4 {offsets = [0, 0, 8], sizes = [1, 8, 8], strides = [1, 1, 1]} : vector<1x8x96xbf16> to vector<1x8x8xbf16>
    %12 = vector.extract_strided_slice %4 {offsets = [0, 0, 40], sizes = [1, 8, 8], strides = [1, 1, 1]} : vector<1x8x96xbf16> to vector<1x8x8xbf16>
    %13 = vector.extract_strided_slice %4 {offsets = [0, 0, 72], sizes = [1, 8, 8], strides = [1, 1, 1]} : vector<1x8x96xbf16> to vector<1x8x8xbf16>
    %cst_5 = arith.constant dense<0.000000e+00> : vector<1x8x8xf32>
    %14 = tpu.matmul %11, %12, %cst_5 {dimension_numbers = #tpu.dot_dimension_numbers<[2], [2], [1], [1], [0, 0, 0, 1, 1, 1], [0], [0]>} : vector<1x8x8xbf16>, vector<1x8x8xbf16>, vector<1x8x8xf32> -> vector<1x8x8xf32>
    %15 = arith.truncf %14 : vector<1x8x8xf32> to vector<1x8x8xbf16>
    %cst_6 = arith.constant dense<0.000000e+00> : vector<1x8x8xf32>
    %16 = tpu.matmul %15, %13, %cst_6 {dimension_numbers = #tpu.dot_dimension_numbers<[2], [1], [1], [2], [0, 0, 0, 1, 1, 2], [0], [0]>} : vector<1x8x8xbf16>, vector<1x8x8xbf16>, vector<1x8x8xf32> -> vector<1x8x8xf32>
    %17 = vector.extract_strided_slice %4 {offsets = [0, 0, 16], sizes = [1, 8, 8], strides = [1, 1, 1]} : vector<1x8x96xbf16> to vector<1x8x8xbf16>
    %18 = vector.extract_strided_slice %4 {offsets = [0, 0, 48], sizes = [1, 8, 8], strides = [1, 1, 1]} : vector<1x8x96xbf16> to vector<1x8x8xbf16>
    %19 = vector.extract_strided_slice %4 {offsets = [0, 0, 80], sizes = [1, 8, 8], strides = [1, 1, 1]} : vector<1x8x96xbf16> to vector<1x8x8xbf16>
    %cst_7 = arith.constant dense<0.000000e+00> : vector<1x8x8xf32>
    %20 = tpu.matmul %17, %18, %cst_7 {dimension_numbers = #tpu.dot_dimension_numbers<[2], [2], [1], [1], [0, 0, 0, 1, 1, 1], [0], [0]>} : vector<1x8x8xbf16>, vector<1x8x8xbf16>, vector<1x8x8xf32> -> vector<1x8x8xf32>
    %21 = arith.truncf %20 : vector<1x8x8xf32> to vector<1x8x8xbf16>
    %cst_8 = arith.constant dense<0.000000e+00> : vector<1x8x8xf32>
    %22 = tpu.matmul %21, %19, %cst_8 {dimension_numbers = #tpu.dot_dimension_numbers<[2], [1], [1], [2], [0, 0, 0, 1, 1, 2], [0], [0]>} : vector<1x8x8xbf16>, vector<1x8x8xbf16>, vector<1x8x8xf32> -> vector<1x8x8xf32>
    %23 = vector.extract_strided_slice %4 {offsets = [0, 0, 24], sizes = [1, 8, 8], strides = [1, 1, 1]} : vector<1x8x96xbf16> to vector<1x8x8xbf16>
    %24 = vector.extract_strided_slice %4 {offsets = [0, 0, 56], sizes = [1, 8, 8], strides = [1, 1, 1]} : vector<1x8x96xbf16> to vector<1x8x8xbf16>
    %25 = vector.extract_strided_slice %4 {offsets = [0, 0, 88], sizes = [1, 8, 8], strides = [1, 1, 1]} : vector<1x8x96xbf16> to vector<1x8x8xbf16>
    %cst_9 = arith.constant dense<0.000000e+00> : vector<1x8x8xf32>
    %26 = tpu.matmul %23, %24, %cst_9 {dimension_numbers = #tpu.dot_dimension_numbers<[2], [2], [1], [1], [0, 0, 0, 1, 1, 1], [0], [0]>} : vector<1x8x8xbf16>, vector<1x8x8xbf16>, vector<1x8x8xf32> -> vector<1x8x8xf32>
    %27 = arith.truncf %26 : vector<1x8x8xf32> to vector<1x8x8xbf16>
    %cst_10 = arith.constant dense<0.000000e+00> : vector<1x8x8xf32>
    %28 = tpu.matmul %27, %25, %cst_10 {dimension_numbers = #tpu.dot_dimension_numbers<[2], [1], [1], [2], [0, 0, 0, 1, 1, 2], [0], [0]>} : vector<1x8x8xbf16>, vector<1x8x8xbf16>, vector<1x8x8xf32> -> vector<1x8x8xf32>
    %29 = tpu.concatenate %10, %16, %22, %28 in 2 : vector<1x8x8xf32>, vector<1x8x8xf32>, vector<1x8x8xf32>, vector<1x8x8xf32> -> vector<1x8x32xf32>
    %c0_11 = arith.constant 0 : index
    %c0_12 = arith.constant 0 : index
    %c0_13 = arith.constant 0 : index
    %30 = vector.load %arg4[%c0_11, %c0_12, %c0_13] : memref<1x8x32xf32, #tpu.memory_space<vmem>>, vector<1x8x32xf32>
    %cst_14 = arith.constant 5.000000e-01 : f32
    %31 = vector.broadcast %cst_14 : f32 to vector<1x8x32xf32>
    %32 = arith.mulf %30, %31 : vector<1x8x32xf32>
    %cst_15 = arith.constant 6.250000e-02 : f32
    %33 = vector.broadcast %cst_15 : f32 to vector<1x8x32xf32>
    %34 = arith.mulf %29, %33 : vector<1x8x32xf32>
    %35 = arith.addf %32, %34 : vector<1x8x32xf32>
    %cst_16 = arith.constant 5.000000e-01 : f32
    %36 = vector.broadcast %cst_16 : f32 to vector<1x8x32xf32>
    %37 = arith.cmpf oge, %35, %36 : vector<1x8x32xf32>
    %cst_17 = arith.constant 0.000000e+00 : f32
    %38 = vector.broadcast %cst_17 : f32 to vector<1x8x32xf32>
    %39 = arith.select %37, %38, %35 : vector<1x8x32xi1>, vector<1x8x32xf32>
    %c0_18 = arith.constant 0 : index
    %c0_19 = arith.constant 0 : index
    %c0_20 = arith.constant 0 : index
    %40 = vector.load %arg4[%c0_18, %c0_19, %c0_20] : memref<1x8x32xf32, #tpu.memory_space<vmem>>, vector<1x8x32xf32>
    tpu.vector_store %arg4[%c0_18, %c0_19, %c0_20], %39 {strides = array<i32>} : memref<1x8x32xf32, #tpu.memory_space<vmem>>, vector<1x8x32xf32>,
    %41 = arith.extui %37 : vector<1x8x32xi1> to vector<1x8x32xi32>
    %42 = arith.sitofp %41 : vector<1x8x32xi32> to vector<1x8x32xf32>
    %43 = arith.truncf %42 : vector<1x8x32xf32> to vector<1x8x32xbf16>
    %c0_21 = arith.constant 0 : index
    %c0_22 = arith.constant 0 : index
    %c0_23 = arith.constant 0 : index
    %c0_24 = arith.constant 0 : index
    %44 = vector.load %arg3[%c0_21, %c0_22, %c0_23, %c0_24] : memref<1x1x8x32xbf16, #tpu.memory_space<vmem>>, vector<1x1x8x32xbf16>
    %45 = vector.shape_cast %44 : vector<1x1x8x32xbf16> to vector<1x8x32xbf16>
    %46 = vector.shape_cast %43 : vector<1x8x32xbf16> to vector<1x1x8x32xbf16>
    tpu.vector_store %arg3[%c0_21, %c0_22, %c0_23, %c0_24], %46 {strides = array<i32>} : memref<1x1x8x32xbf16, #tpu.memory_space<vmem>>, vector<1x1x8x32xbf16>,
    return
  }
  func.func @transform_0(%arg0: i32, %arg1: i32) -> (i32, i32, i32, i32) {
    %c0_i32 = arith.constant 0 : i32
    %c0_i32_0 = arith.constant 0 : i32
    %c0_i32_1 = arith.constant 0 : i32
    return %arg1, %arg0, %c0_i32, %c0_i32_0 : i32, i32, i32, i32
  }
  func.func @transform_1(%arg0: i32, %arg1: i32) -> (i32, i32, i32, i32) {
    %c0_i32 = arith.constant 0 : i32
    %c0_i32_0 = arith.constant 0 : i32
    %c0_i32_1 = arith.constant 0 : i32
    return %arg1, %arg0, %c0_i32, %c0_i32_0 : i32, i32, i32, i32
  }
}

module attributes {stable_mosaic.version = 11 : i64} {
  func.func @_qkv_lin_ln_lif_kernel(%arg0: i32, %arg1: i32, %arg2: memref<1x8x32xbf16, #tpu.memory_space<vmem>>, %arg3: memref<32x96xbf16, #tpu.memory_space<vmem>>, %arg4: memref<1x96xf32, #tpu.memory_space<vmem>>, %arg5: memref<1x96xf32, #tpu.memory_space<vmem>>, %arg6: memref<1x96xf32, #tpu.memory_space<vmem>>, %arg7: memref<1x8x96xbf16, #tpu.memory_space<vmem>>, %arg8: memref<8x96xf32, #tpu.memory_space<vmem>>) attributes {dimension_semantics = [#tpu.dimension_semantics<parallel>, #tpu.dimension_semantics<arbitrary>], iteration_bounds = array<i64: 2, 2>, scalar_prefetch = 0 : i64, scratch_operands = 1 : i64, tpu.core_type = #tpu.core_type<tc>, window_params = [{transform_indices = @transform_0, window_bounds = array<i64: 1, 8, 32>}, {pipeline_mode = #tpu.pipeline_mode<synchronous>, transform_indices = @transform_1, window_bounds = array<i64: 32, 96>}, {pipeline_mode = #tpu.pipeline_mode<synchronous>, transform_indices = @transform_2, window_bounds = array<i64: 1, 96>}, {pipeline_mode = #tpu.pipeline_mode<synchronous>, transform_indices = @transform_3, window_bounds = array<i64: 1, 96>}, {pipeline_mode = #tpu.pipeline_mode<synchronous>, transform_indices = @transform_4, window_bounds = array<i64: 1, 96>}, {transform_indices = @transform_5, window_bounds = array<i64: 1, 8, 96>}]} {
    %c0_i32 = arith.constant 0 : i32
    %0 = arith.cmpi eq, %arg1, %c0_i32 : i32
    %1 = arith.extui %0 : i1 to i32
    %c0_i32_0 = arith.constant 0 : i32
    %2 = arith.cmpi ne, %1, %c0_i32_0 : i32
    scf.if %2 {
      %cst_52 = arith.constant 0.000000e+00 : f32
      %122 = vector.broadcast %cst_52 : f32 to vector<8x96xf32>
      %c0_53 = arith.constant 0 : index
      %c0_54 = arith.constant 0 : index
      %123 = vector.load %arg8[%c0_53, %c0_54] : memref<8x96xf32, #tpu.memory_space<vmem>>, vector<8x96xf32>
      tpu.vector_store %arg8[%c0_53, %c0_54], %122 {strides = array<i32>} : memref<8x96xf32, #tpu.memory_space<vmem>>, vector<8x96xf32>,
    } else {
    }
    %c0 = arith.constant 0 : index
    %c0_1 = arith.constant 0 : index
    %c0_2 = arith.constant 0 : index
    %3 = vector.load %arg2[%c0, %c0_1, %c0_2] : memref<1x8x32xbf16, #tpu.memory_space<vmem>>, vector<1x8x32xbf16>
    %4 = vector.shape_cast %3 : vector<1x8x32xbf16> to vector<8x32xbf16>
    %c0_3 = arith.constant 0 : index
    %c0_4 = arith.constant 0 : index
    %5 = vector.load %arg3[%c0_3, %c0_4] : memref<32x96xbf16, #tpu.memory_space<vmem>>, vector<32x96xbf16>
    %cst = arith.constant dense<0.000000e+00> : vector<8x96xf32>
    %6 = tpu.matmul %4, %5, %cst {dimension_numbers = #tpu.dot_dimension_numbers<[1], [0], [0], [1], [0, 0, 1, 1], [], []>} : vector<8x32xbf16>, vector<32x96xbf16>, vector<8x96xf32> -> vector<8x96xf32>
    %c0_5 = arith.constant 0 : index
    %c0_6 = arith.constant 0 : index
    %7 = vector.load %arg4[%c0_5, %c0_6] : memref<1x96xf32, #tpu.memory_space<vmem>>, vector<1x96xf32>
    %8 = vector.broadcast %7 : vector<1x96xf32> to vector<8x96xf32>
    %9 = arith.addf %6, %8 : vector<8x96xf32>
    %10 = vector.extract_strided_slice %9 {offsets = [0, 0], sizes = [8, 32], strides = [1, 1]} : vector<8x96xf32> to vector<8x32xf32>
    %c0_7 = arith.constant 0 : index
    %c0_8 = arith.constant 0 : index
    %11 = vector.load %arg5[%c0_7, %c0_8] : memref<1x96xf32, #tpu.memory_space<vmem>>, vector<1x32xf32>
    %c0_9 = arith.constant 0 : index
    %c0_10 = arith.constant 0 : index
    %12 = vector.load %arg6[%c0_9, %c0_10] : memref<1x96xf32, #tpu.memory_space<vmem>>, vector<1x32xf32>
    %cst_11 = arith.constant dense<0.000000e+00> : vector<8xf32>
    %13 = vector.multi_reduction <add>, %10, %cst_11 [1] : vector<8x32xf32> to vector<8xf32>
    %14 = vector.shape_cast %13 : vector<8xf32> to vector<8x1xf32>
    %cst_12 = arith.constant 3.200000e+01 : f32
    %15 = vector.broadcast %cst_12 : f32 to vector<8x1xf32>
    %16 = arith.divf %14, %15 : vector<8x1xf32>
    %17 = arith.mulf %10, %10 : vector<8x32xf32>
    %cst_13 = arith.constant dense<0.000000e+00> : vector<8xf32>
    %18 = vector.multi_reduction <add>, %17, %cst_13 [1] : vector<8x32xf32> to vector<8xf32>
    %19 = vector.shape_cast %18 : vector<8xf32> to vector<8x1xf32>
    %cst_14 = arith.constant 3.200000e+01 : f32
    %20 = vector.broadcast %cst_14 : f32 to vector<8x1xf32>
    %21 = arith.divf %19, %20 : vector<8x1xf32>
    %22 = arith.mulf %16, %16 : vector<8x1xf32>
    %23 = arith.subf %21, %22 : vector<8x1xf32>
    %24 = vector.broadcast %16 : vector<8x1xf32> to vector<8x32xf32>
    %25 = arith.subf %10, %24 : vector<8x32xf32>
    %cst_15 = arith.constant 9.99999974E-6 : f32
    %26 = vector.broadcast %cst_15 : f32 to vector<8x1xf32>
    %27 = arith.addf %23, %26 : vector<8x1xf32>
    %28 = math.rsqrt %27 : vector<8x1xf32>
    %29 = vector.broadcast %28 : vector<8x1xf32> to vector<8x32xf32>
    %30 = arith.mulf %25, %29 : vector<8x32xf32>
    %31 = vector.broadcast %11 : vector<1x32xf32> to vector<8x32xf32>
    %32 = arith.mulf %30, %31 : vector<8x32xf32>
    %33 = vector.broadcast %12 : vector<1x32xf32> to vector<8x32xf32>
    %34 = arith.addf %32, %33 : vector<8x32xf32>
    %c0_16 = arith.constant 0 : index
    %c0_17 = arith.constant 0 : index
    %35 = vector.load %arg8[%c0_16, %c0_17] : memref<8x96xf32, #tpu.memory_space<vmem>>, vector<8x32xf32>
    %cst_18 = arith.constant 5.000000e-01 : f32
    %36 = vector.broadcast %cst_18 : f32 to vector<8x32xf32>
    %37 = arith.mulf %35, %36 : vector<8x32xf32>
    %38 = arith.addf %37, %34 : vector<8x32xf32>
    %cst_19 = arith.constant 1.000000e+00 : f32
    %39 = vector.broadcast %cst_19 : f32 to vector<8x32xf32>
    %40 = arith.cmpf oge, %38, %39 : vector<8x32xf32>
    %cst_20 = arith.constant 0.000000e+00 : f32
    %41 = vector.broadcast %cst_20 : f32 to vector<8x32xf32>
    %42 = arith.select %40, %41, %38 : vector<8x32xi1>, vector<8x32xf32>
    %43 = arith.extui %40 : vector<8x32xi1> to vector<8x32xi32>
    %44 = arith.sitofp %43 : vector<8x32xi32> to vector<8x32xf32>
    %45 = vector.extract_strided_slice %9 {offsets = [0, 32], sizes = [8, 32], strides = [1, 1]} : vector<8x96xf32> to vector<8x32xf32>
    %c0_21 = arith.constant 0 : index
    %c32 = arith.constant 32 : index
    %46 = vector.load %arg5[%c0_21, %c32] : memref<1x96xf32, #tpu.memory_space<vmem>>, vector<1x32xf32>
    %c0_22 = arith.constant 0 : index
    %c32_23 = arith.constant 32 : index
    %47 = vector.load %arg6[%c0_22, %c32_23] : memref<1x96xf32, #tpu.memory_space<vmem>>, vector<1x32xf32>
    %cst_24 = arith.constant dense<0.000000e+00> : vector<8xf32>
    %48 = vector.multi_reduction <add>, %45, %cst_24 [1] : vector<8x32xf32> to vector<8xf32>
    %49 = vector.shape_cast %48 : vector<8xf32> to vector<8x1xf32>
    %cst_25 = arith.constant 3.200000e+01 : f32
    %50 = vector.broadcast %cst_25 : f32 to vector<8x1xf32>
    %51 = arith.divf %49, %50 : vector<8x1xf32>
    %52 = arith.mulf %45, %45 : vector<8x32xf32>
    %cst_26 = arith.constant dense<0.000000e+00> : vector<8xf32>
    %53 = vector.multi_reduction <add>, %52, %cst_26 [1] : vector<8x32xf32> to vector<8xf32>
    %54 = vector.shape_cast %53 : vector<8xf32> to vector<8x1xf32>
    %cst_27 = arith.constant 3.200000e+01 : f32
    %55 = vector.broadcast %cst_27 : f32 to vector<8x1xf32>
    %56 = arith.divf %54, %55 : vector<8x1xf32>
    %57 = arith.mulf %51, %51 : vector<8x1xf32>
    %58 = arith.subf %56, %57 : vector<8x1xf32>
    %59 = vector.broadcast %51 : vector<8x1xf32> to vector<8x32xf32>
    %60 = arith.subf %45, %59 : vector<8x32xf32>
    %cst_28 = arith.constant 9.99999974E-6 : f32
    %61 = vector.broadcast %cst_28 : f32 to vector<8x1xf32>
    %62 = arith.addf %58, %61 : vector<8x1xf32>
    %63 = math.rsqrt %62 : vector<8x1xf32>
    %64 = vector.broadcast %63 : vector<8x1xf32> to vector<8x32xf32>
    %65 = arith.mulf %60, %64 : vector<8x32xf32>
    %66 = vector.broadcast %46 : vector<1x32xf32> to vector<8x32xf32>
    %67 = arith.mulf %65, %66 : vector<8x32xf32>
    %68 = vector.broadcast %47 : vector<1x32xf32> to vector<8x32xf32>
    %69 = arith.addf %67, %68 : vector<8x32xf32>
    %c0_29 = arith.constant 0 : index
    %c32_30 = arith.constant 32 : index
    %70 = vector.load %arg8[%c0_29, %c32_30] : memref<8x96xf32, #tpu.memory_space<vmem>>, vector<8x32xf32>
    %cst_31 = arith.constant 5.000000e-01 : f32
    %71 = vector.broadcast %cst_31 : f32 to vector<8x32xf32>
    %72 = arith.mulf %70, %71 : vector<8x32xf32>
    %73 = arith.addf %72, %69 : vector<8x32xf32>
    %cst_32 = arith.constant 1.000000e+00 : f32
    %74 = vector.broadcast %cst_32 : f32 to vector<8x32xf32>
    %75 = arith.cmpf oge, %73, %74 : vector<8x32xf32>
    %cst_33 = arith.constant 0.000000e+00 : f32
    %76 = vector.broadcast %cst_33 : f32 to vector<8x32xf32>
    %77 = arith.select %75, %76, %73 : vector<8x32xi1>, vector<8x32xf32>
    %78 = arith.extui %75 : vector<8x32xi1> to vector<8x32xi32>
    %79 = arith.sitofp %78 : vector<8x32xi32> to vector<8x32xf32>
    %80 = vector.extract_strided_slice %9 {offsets = [0, 64], sizes = [8, 32], strides = [1, 1]} : vector<8x96xf32> to vector<8x32xf32>
    %c0_34 = arith.constant 0 : index
    %c64 = arith.constant 64 : index
    %81 = vector.load %arg5[%c0_34, %c64] : memref<1x96xf32, #tpu.memory_space<vmem>>, vector<1x32xf32>
    %c0_35 = arith.constant 0 : index
    %c64_36 = arith.constant 64 : index
    %82 = vector.load %arg6[%c0_35, %c64_36] : memref<1x96xf32, #tpu.memory_space<vmem>>, vector<1x32xf32>
    %cst_37 = arith.constant dense<0.000000e+00> : vector<8xf32>
    %83 = vector.multi_reduction <add>, %80, %cst_37 [1] : vector<8x32xf32> to vector<8xf32>
    %84 = vector.shape_cast %83 : vector<8xf32> to vector<8x1xf32>
    %cst_38 = arith.constant 3.200000e+01 : f32
    %85 = vector.broadcast %cst_38 : f32 to vector<8x1xf32>
    %86 = arith.divf %84, %85 : vector<8x1xf32>
    %87 = arith.mulf %80, %80 : vector<8x32xf32>
    %cst_39 = arith.constant dense<0.000000e+00> : vector<8xf32>
    %88 = vector.multi_reduction <add>, %87, %cst_39 [1] : vector<8x32xf32> to vector<8xf32>
    %89 = vector.shape_cast %88 : vector<8xf32> to vector<8x1xf32>
    %cst_40 = arith.constant 3.200000e+01 : f32
    %90 = vector.broadcast %cst_40 : f32 to vector<8x1xf32>
    %91 = arith.divf %89, %90 : vector<8x1xf32>
    %92 = arith.mulf %86, %86 : vector<8x1xf32>
    %93 = arith.subf %91, %92 : vector<8x1xf32>
    %94 = vector.broadcast %86 : vector<8x1xf32> to vector<8x32xf32>
    %95 = arith.subf %80, %94 : vector<8x32xf32>
    %cst_41 = arith.constant 9.99999974E-6 : f32
    %96 = vector.broadcast %cst_41 : f32 to vector<8x1xf32>
    %97 = arith.addf %93, %96 : vector<8x1xf32>
    %98 = math.rsqrt %97 : vector<8x1xf32>
    %99 = vector.broadcast %98 : vector<8x1xf32> to vector<8x32xf32>
    %100 = arith.mulf %95, %99 : vector<8x32xf32>
    %101 = vector.broadcast %81 : vector<1x32xf32> to vector<8x32xf32>
    %102 = arith.mulf %100, %101 : vector<8x32xf32>
    %103 = vector.broadcast %82 : vector<1x32xf32> to vector<8x32xf32>
    %104 = arith.addf %102, %103 : vector<8x32xf32>
    %c0_42 = arith.constant 0 : index
    %c64_43 = arith.constant 64 : index
    %105 = vector.load %arg8[%c0_42, %c64_43] : memref<8x96xf32, #tpu.memory_space<vmem>>, vector<8x32xf32>
    %cst_44 = arith.constant 5.000000e-01 : f32
    %106 = vector.broadcast %cst_44 : f32 to vector<8x32xf32>
    %107 = arith.mulf %105, %106 : vector<8x32xf32>
    %108 = arith.addf %107, %104 : vector<8x32xf32>
    %cst_45 = arith.constant 1.000000e+00 : f32
    %109 = vector.broadcast %cst_45 : f32 to vector<8x32xf32>
    %110 = arith.cmpf oge, %108, %109 : vector<8x32xf32>
    %cst_46 = arith.constant 0.000000e+00 : f32
    %111 = vector.broadcast %cst_46 : f32 to vector<8x32xf32>
    %112 = arith.select %110, %111, %108 : vector<8x32xi1>, vector<8x32xf32>
    %113 = arith.extui %110 : vector<8x32xi1> to vector<8x32xi32>
    %114 = arith.sitofp %113 : vector<8x32xi32> to vector<8x32xf32>
    %115 = tpu.concatenate %42, %77, %112 in 1 : vector<8x32xf32>, vector<8x32xf32>, vector<8x32xf32> -> vector<8x96xf32>
    %c0_47 = arith.constant 0 : index
    %c0_48 = arith.constant 0 : index
    %116 = vector.load %arg8[%c0_47, %c0_48] : memref<8x96xf32, #tpu.memory_space<vmem>>, vector<8x96xf32>
    tpu.vector_store %arg8[%c0_47, %c0_48], %115 {strides = array<i32>} : memref<8x96xf32, #tpu.memory_space<vmem>>, vector<8x96xf32>,
    %117 = tpu.concatenate %44, %79, %114 in 1 : vector<8x32xf32>, vector<8x32xf32>, vector<8x32xf32> -> vector<8x96xf32>
    %118 = arith.truncf %117 : vector<8x96xf32> to vector<8x96xbf16>
    %c0_49 = arith.constant 0 : index
    %c0_50 = arith.constant 0 : index
    %c0_51 = arith.constant 0 : index
    %119 = vector.load %arg7[%c0_49, %c0_50, %c0_51] : memref<1x8x96xbf16, #tpu.memory_space<vmem>>, vector<1x8x96xbf16>
    %120 = vector.shape_cast %119 : vector<1x8x96xbf16> to vector<8x96xbf16>
    %121 = vector.shape_cast %118 : vector<8x96xbf16> to vector<1x8x96xbf16>
    tpu.vector_store %arg7[%c0_49, %c0_50, %c0_51], %121 {strides = array<i32>} : memref<1x8x96xbf16, #tpu.memory_space<vmem>>, vector<1x8x96xbf16>,
    return
  }
  func.func @transform_0(%arg0: i32, %arg1: i32) -> (i32, i32, i32) {
    %c0_i32 = arith.constant 0 : i32
    %c0_i32_0 = arith.constant 0 : i32
    return %arg1, %arg0, %c0_i32 : i32, i32, i32
  }
  func.func @transform_1(%arg0: i32, %arg1: i32) -> (i32, i32) {
    %c0_i32 = arith.constant 0 : i32
    %c0_i32_0 = arith.constant 0 : i32
    %c0_i32_1 = arith.constant 0 : i32
    return %c0_i32, %c0_i32_0 : i32, i32
  }
  func.func @transform_2(%arg0: i32, %arg1: i32) -> (i32, i32) {
    %c0_i32 = arith.constant 0 : i32
    %c0_i32_0 = arith.constant 0 : i32
    %c0_i32_1 = arith.constant 0 : i32
    return %c0_i32, %c0_i32_0 : i32, i32
  }
  func.func @transform_3(%arg0: i32, %arg1: i32) -> (i32, i32) {
    %c0_i32 = arith.constant 0 : i32
    %c0_i32_0 = arith.constant 0 : i32
    %c0_i32_1 = arith.constant 0 : i32
    return %c0_i32, %c0_i32_0 : i32, i32
  }
  func.func @transform_4(%arg0: i32, %arg1: i32) -> (i32, i32) {
    %c0_i32 = arith.constant 0 : i32
    %c0_i32_0 = arith.constant 0 : i32
    %c0_i32_1 = arith.constant 0 : i32
    return %c0_i32, %c0_i32_0 : i32, i32
  }
  func.func @transform_5(%arg0: i32, %arg1: i32) -> (i32, i32, i32) {
    %c0_i32 = arith.constant 0 : i32
    %c0_i32_0 = arith.constant 0 : i32
    return %arg1, %arg0, %c0_i32 : i32, i32, i32
  }
}

module attributes {stable_mosaic.version = 11 : i64} {
  func.func @_lin_ln_lif_res_kernel(%arg0: i32, %arg1: i32, %arg2: memref<1x8x32xbf16, #tpu.memory_space<vmem>>, %arg3: memref<32x32xbf16, #tpu.memory_space<vmem>>, %arg4: memref<1x32xf32, #tpu.memory_space<vmem>>, %arg5: memref<1x32xf32, #tpu.memory_space<vmem>>, %arg6: memref<1x32xf32, #tpu.memory_space<vmem>>, %arg7: memref<1x8x32xbf16, #tpu.memory_space<vmem>>, %arg8: memref<1x8x32xbf16, #tpu.memory_space<vmem>>, %arg9: memref<8x32xf32, #tpu.memory_space<vmem>>) attributes {dimension_semantics = [#tpu.dimension_semantics<parallel>, #tpu.dimension_semantics<arbitrary>], iteration_bounds = array<i64: 2, 2>, scalar_prefetch = 0 : i64, scratch_operands = 1 : i64, tpu.core_type = #tpu.core_type<tc>, window_params = [{transform_indices = @transform_0, window_bounds = array<i64: 1, 8, 32>}, {pipeline_mode = #tpu.pipeline_mode<synchronous>, transform_indices = @transform_1, window_bounds = array<i64: 32, 32>}, {pipeline_mode = #tpu.pipeline_mode<synchronous>, transform_indices = @transform_2, window_bounds = array<i64: 1, 32>}, {pipeline_mode = #tpu.pipeline_mode<synchronous>, transform_indices = @transform_3, window_bounds = array<i64: 1, 32>}, {pipeline_mode = #tpu.pipeline_mode<synchronous>, transform_indices = @transform_4, window_bounds = array<i64: 1, 32>}, {transform_indices = @transform_5, window_bounds = array<i64: 1, 8, 32>}, {transform_indices = @transform_6, window_bounds = array<i64: 1, 8, 32>}]} {
    %c0_i32 = arith.constant 0 : i32
    %0 = arith.cmpi eq, %arg1, %c0_i32 : i32
    %1 = arith.extui %0 : i1 to i32
    %c0_i32_0 = arith.constant 0 : i32
    %2 = arith.cmpi ne, %1, %c0_i32_0 : i32
    scf.if %2 {
      %cst_29 = arith.constant 0.000000e+00 : f32
      %52 = vector.broadcast %cst_29 : f32 to vector<8x32xf32>
      %c0_30 = arith.constant 0 : index
      %c0_31 = arith.constant 0 : index
      %53 = vector.load %arg9[%c0_30, %c0_31] : memref<8x32xf32, #tpu.memory_space<vmem>>, vector<8x32xf32>
      tpu.vector_store %arg9[%c0_30, %c0_31], %52 {strides = array<i32>} : memref<8x32xf32, #tpu.memory_space<vmem>>, vector<8x32xf32>,
    } else {
    }
    %c0 = arith.constant 0 : index
    %c0_1 = arith.constant 0 : index
    %c0_2 = arith.constant 0 : index
    %3 = vector.load %arg2[%c0, %c0_1, %c0_2] : memref<1x8x32xbf16, #tpu.memory_space<vmem>>, vector<1x8x32xbf16>
    %4 = vector.shape_cast %3 : vector<1x8x32xbf16> to vector<8x32xbf16>
    %c0_3 = arith.constant 0 : index
    %c0_4 = arith.constant 0 : index
    %5 = vector.load %arg3[%c0_3, %c0_4] : memref<32x32xbf16, #tpu.memory_space<vmem>>, vector<32x32xbf16>
    %cst = arith.constant dense<0.000000e+00> : vector<8x32xf32>
    %6 = tpu.matmul %4, %5, %cst {dimension_numbers = #tpu.dot_dimension_numbers<[1], [0], [0], [1], [0, 0, 1, 1], [], []>} : vector<8x32xbf16>, vector<32x32xbf16>, vector<8x32xf32> -> vector<8x32xf32>
    %c0_5 = arith.constant 0 : index
    %c0_6 = arith.constant 0 : index
    %7 = vector.load %arg4[%c0_5, %c0_6] : memref<1x32xf32, #tpu.memory_space<vmem>>, vector<1x32xf32>
    %8 = vector.broadcast %7 : vector<1x32xf32> to vector<8x32xf32>
    %9 = arith.addf %6, %8 : vector<8x32xf32>
    %c0_7 = arith.constant 0 : index
    %c0_8 = arith.constant 0 : index
    %10 = vector.load %arg5[%c0_7, %c0_8] : memref<1x32xf32, #tpu.memory_space<vmem>>, vector<1x32xf32>
    %c0_9 = arith.constant 0 : index
    %c0_10 = arith.constant 0 : index
    %11 = vector.load %arg6[%c0_9, %c0_10] : memref<1x32xf32, #tpu.memory_space<vmem>>, vector<1x32xf32>
    %cst_11 = arith.constant dense<0.000000e+00> : vector<8xf32>
    %12 = vector.multi_reduction <add>, %9, %cst_11 [1] : vector<8x32xf32> to vector<8xf32>
    %13 = vector.shape_cast %12 : vector<8xf32> to vector<8x1xf32>
    %cst_12 = arith.constant 3.200000e+01 : f32
    %14 = vector.broadcast %cst_12 : f32 to vector<8x1xf32>
    %15 = arith.divf %13, %14 : vector<8x1xf32>
    %16 = arith.mulf %9, %9 : vector<8x32xf32>
    %cst_13 = arith.constant dense<0.000000e+00> : vector<8xf32>
    %17 = vector.multi_reduction <add>, %16, %cst_13 [1] : vector<8x32xf32> to vector<8xf32>
    %18 = vector.shape_cast %17 : vector<8xf32> to vector<8x1xf32>
    %cst_14 = arith.constant 3.200000e+01 : f32
    %19 = vector.broadcast %cst_14 : f32 to vector<8x1xf32>
    %20 = arith.divf %18, %19 : vector<8x1xf32>
    %21 = arith.mulf %15, %15 : vector<8x1xf32>
    %22 = arith.subf %20, %21 : vector<8x1xf32>
    %23 = vector.broadcast %15 : vector<8x1xf32> to vector<8x32xf32>
    %24 = arith.subf %9, %23 : vector<8x32xf32>
    %cst_15 = arith.constant 9.99999974E-6 : f32
    %25 = vector.broadcast %cst_15 : f32 to vector<8x1xf32>
    %26 = arith.addf %22, %25 : vector<8x1xf32>
    %27 = math.rsqrt %26 : vector<8x1xf32>
    %28 = vector.broadcast %27 : vector<8x1xf32> to vector<8x32xf32>
    %29 = arith.mulf %24, %28 : vector<8x32xf32>
    %30 = vector.broadcast %10 : vector<1x32xf32> to vector<8x32xf32>
    %31 = arith.mulf %29, %30 : vector<8x32xf32>
    %32 = vector.broadcast %11 : vector<1x32xf32> to vector<8x32xf32>
    %33 = arith.addf %31, %32 : vector<8x32xf32>
    %c0_16 = arith.constant 0 : index
    %c0_17 = arith.constant 0 : index
    %34 = vector.load %arg9[%c0_16, %c0_17] : memref<8x32xf32, #tpu.memory_space<vmem>>, vector<8x32xf32>
    %cst_18 = arith.constant 5.000000e-01 : f32
    %35 = vector.broadcast %cst_18 : f32 to vector<8x32xf32>
    %36 = arith.mulf %34, %35 : vector<8x32xf32>
    %37 = arith.addf %36, %33 : vector<8x32xf32>
    %cst_19 = arith.constant 1.000000e+00 : f32
    %38 = vector.broadcast %cst_19 : f32 to vector<8x32xf32>
    %39 = arith.cmpf oge, %37, %38 : vector<8x32xf32>
    %cst_20 = arith.constant 0.000000e+00 : f32
    %40 = vector.broadcast %cst_20 : f32 to vector<8x32xf32>
    %41 = arith.select %39, %40, %37 : vector<8x32xi1>, vector<8x32xf32>
    %c0_21 = arith.constant 0 : index
    %c0_22 = arith.constant 0 : index
    %42 = vector.load %arg9[%c0_21, %c0_22] : memref<8x32xf32, #tpu.memory_space<vmem>>, vector<8x32xf32>
    tpu.vector_store %arg9[%c0_21, %c0_22], %41 {strides = array<i32>} : memref<8x32xf32, #tpu.memory_space<vmem>>, vector<8x32xf32>,
    %c0_23 = arith.constant 0 : index
    %c0_24 = arith.constant 0 : index
    %c0_25 = arith.constant 0 : index
    %43 = vector.load %arg7[%c0_23, %c0_24, %c0_25] : memref<1x8x32xbf16, #tpu.memory_space<vmem>>, vector<1x8x32xbf16>
    %44 = vector.shape_cast %43 : vector<1x8x32xbf16> to vector<8x32xbf16>
    %45 = arith.extui %39 : vector<8x32xi1> to vector<8x32xi32>
    %46 = arith.sitofp %45 : vector<8x32xi32> to vector<8x32xf32>
    %47 = arith.truncf %46 : vector<8x32xf32> to vector<8x32xbf16>
    %48 = arith.addf %44, %47 : vector<8x32xbf16>
    %c0_26 = arith.constant 0 : index
    %c0_27 = arith.constant 0 : index
    %c0_28 = arith.constant 0 : index
    %49 = vector.load %arg8[%c0_26, %c0_27, %c0_28] : memref<1x8x32xbf16, #tpu.memory_space<vmem>>, vector<1x8x32xbf16>
    %50 = vector.shape_cast %49 : vector<1x8x32xbf16> to vector<8x32xbf16>
    %51 = vector.shape_cast %48 : vector<8x32xbf16> to vector<1x8x32xbf16>
    tpu.vector_store %arg8[%c0_26, %c0_27, %c0_28], %51 {strides = array<i32>} : memref<1x8x32xbf16, #tpu.memory_space<vmem>>, vector<1x8x32xbf16>,
    return
  }
  func.func @transform_0(%arg0: i32, %arg1: i32) -> (i32, i32, i32) {
    %c0_i32 = arith.constant 0 : i32
    %c0_i32_0 = arith.constant 0 : i32
    return %arg1, %arg0, %c0_i32 : i32, i32, i32
  }
  func.func @transform_1(%arg0: i32, %arg1: i32) -> (i32, i32) {
    %c0_i32 = arith.constant 0 : i32
    %c0_i32_0 = arith.constant 0 : i32
    %c0_i32_1 = arith.constant 0 : i32
    return %c0_i32, %c0_i32_0 : i32, i32
  }
  func.func @transform_2(%arg0: i32, %arg1: i32) -> (i32, i32) {
    %c0_i32 = arith.constant 0 : i32
    %c0_i32_0 = arith.constant 0 : i32
    %c0_i32_1 = arith.constant 0 : i32
    return %c0_i32, %c0_i32_0 : i32, i32
  }
  func.func @transform_3(%arg0: i32, %arg1: i32) -> (i32, i32) {
    %c0_i32 = arith.constant 0 : i32
    %c0_i32_0 = arith.constant 0 : i32
    %c0_i32_1 = arith.constant 0 : i32
    return %c0_i32, %c0_i32_0 : i32, i32
  }
  func.func @transform_4(%arg0: i32, %arg1: i32) -> (i32, i32) {
    %c0_i32 = arith.constant 0 : i32
    %c0_i32_0 = arith.constant 0 : i32
    %c0_i32_1 = arith.constant 0 : i32
    return %c0_i32, %c0_i32_0 : i32, i32
  }
  func.func @transform_5(%arg0: i32, %arg1: i32) -> (i32, i32, i32) {
    %c0_i32 = arith.constant 0 : i32
    %c0_i32_0 = arith.constant 0 : i32
    return %arg1, %arg0, %c0_i32 : i32, i32, i32
  }
  func.func @transform_6(%arg0: i32, %arg1: i32) -> (i32, i32, i32) {
    %c0_i32 = arith.constant 0 : i32
    %c0_i32_0 = arith.constant 0 : i32
    return %arg1, %arg0, %c0_i32 : i32, i32, i32
  }
}

module attributes {stable_mosaic.version = 11 : i64} {
  func.func @_lin_ln_lif_kernel(%arg0: i32, %arg1: i32, %arg2: memref<1x8x32xbf16, #tpu.memory_space<vmem>>, %arg3: memref<32x128xbf16, #tpu.memory_space<vmem>>, %arg4: memref<1x128xf32, #tpu.memory_space<vmem>>, %arg5: memref<1x128xf32, #tpu.memory_space<vmem>>, %arg6: memref<1x128xf32, #tpu.memory_space<vmem>>, %arg7: memref<1x8x128xbf16, #tpu.memory_space<vmem>>, %arg8: memref<8x128xf32, #tpu.memory_space<vmem>>) attributes {dimension_semantics = [#tpu.dimension_semantics<parallel>, #tpu.dimension_semantics<arbitrary>], iteration_bounds = array<i64: 2, 2>, scalar_prefetch = 0 : i64, scratch_operands = 1 : i64, tpu.core_type = #tpu.core_type<tc>, window_params = [{transform_indices = @transform_0, window_bounds = array<i64: 1, 8, 32>}, {pipeline_mode = #tpu.pipeline_mode<synchronous>, transform_indices = @transform_1, window_bounds = array<i64: 32, 128>}, {pipeline_mode = #tpu.pipeline_mode<synchronous>, transform_indices = @transform_2, window_bounds = array<i64: 1, 128>}, {pipeline_mode = #tpu.pipeline_mode<synchronous>, transform_indices = @transform_3, window_bounds = array<i64: 1, 128>}, {pipeline_mode = #tpu.pipeline_mode<synchronous>, transform_indices = @transform_4, window_bounds = array<i64: 1, 128>}, {transform_indices = @transform_5, window_bounds = array<i64: 1, 8, 128>}]} {
    %c0_i32 = arith.constant 0 : i32
    %0 = arith.cmpi eq, %arg1, %c0_i32 : i32
    %1 = arith.extui %0 : i1 to i32
    %c0_i32_0 = arith.constant 0 : i32
    %2 = arith.cmpi ne, %1, %c0_i32_0 : i32
    scf.if %2 {
      %cst_26 = arith.constant 0.000000e+00 : f32
      %49 = vector.broadcast %cst_26 : f32 to vector<8x128xf32>
      %c0_27 = arith.constant 0 : index
      %c0_28 = arith.constant 0 : index
      %50 = vector.load %arg8[%c0_27, %c0_28] : memref<8x128xf32, #tpu.memory_space<vmem>>, vector<8x128xf32>
      tpu.vector_store %arg8[%c0_27, %c0_28], %49 {strides = array<i32>} : memref<8x128xf32, #tpu.memory_space<vmem>>, vector<8x128xf32>,
    } else {
    }
    %c0 = arith.constant 0 : index
    %c0_1 = arith.constant 0 : index
    %c0_2 = arith.constant 0 : index
    %3 = vector.load %arg2[%c0, %c0_1, %c0_2] : memref<1x8x32xbf16, #tpu.memory_space<vmem>>, vector<1x8x32xbf16>
    %4 = vector.shape_cast %3 : vector<1x8x32xbf16> to vector<8x32xbf16>
    %c0_3 = arith.constant 0 : index
    %c0_4 = arith.constant 0 : index
    %5 = vector.load %arg3[%c0_3, %c0_4] : memref<32x128xbf16, #tpu.memory_space<vmem>>, vector<32x128xbf16>
    %cst = arith.constant dense<0.000000e+00> : vector<8x128xf32>
    %6 = tpu.matmul %4, %5, %cst {dimension_numbers = #tpu.dot_dimension_numbers<[1], [0], [0], [1], [0, 0, 1, 1], [], []>} : vector<8x32xbf16>, vector<32x128xbf16>, vector<8x128xf32> -> vector<8x128xf32>
    %c0_5 = arith.constant 0 : index
    %c0_6 = arith.constant 0 : index
    %7 = vector.load %arg4[%c0_5, %c0_6] : memref<1x128xf32, #tpu.memory_space<vmem>>, vector<1x128xf32>
    %8 = vector.broadcast %7 : vector<1x128xf32> to vector<8x128xf32>
    %9 = arith.addf %6, %8 : vector<8x128xf32>
    %c0_7 = arith.constant 0 : index
    %c0_8 = arith.constant 0 : index
    %10 = vector.load %arg5[%c0_7, %c0_8] : memref<1x128xf32, #tpu.memory_space<vmem>>, vector<1x128xf32>
    %c0_9 = arith.constant 0 : index
    %c0_10 = arith.constant 0 : index
    %11 = vector.load %arg6[%c0_9, %c0_10] : memref<1x128xf32, #tpu.memory_space<vmem>>, vector<1x128xf32>
    %cst_11 = arith.constant dense<0.000000e+00> : vector<8xf32>
    %12 = vector.multi_reduction <add>, %9, %cst_11 [1] : vector<8x128xf32> to vector<8xf32>
    %13 = vector.shape_cast %12 : vector<8xf32> to vector<8x1xf32>
    %cst_12 = arith.constant 1.280000e+02 : f32
    %14 = vector.broadcast %cst_12 : f32 to vector<8x1xf32>
    %15 = arith.divf %13, %14 : vector<8x1xf32>
    %16 = arith.mulf %9, %9 : vector<8x128xf32>
    %cst_13 = arith.constant dense<0.000000e+00> : vector<8xf32>
    %17 = vector.multi_reduction <add>, %16, %cst_13 [1] : vector<8x128xf32> to vector<8xf32>
    %18 = vector.shape_cast %17 : vector<8xf32> to vector<8x1xf32>
    %cst_14 = arith.constant 1.280000e+02 : f32
    %19 = vector.broadcast %cst_14 : f32 to vector<8x1xf32>
    %20 = arith.divf %18, %19 : vector<8x1xf32>
    %21 = arith.mulf %15, %15 : vector<8x1xf32>
    %22 = arith.subf %20, %21 : vector<8x1xf32>
    %23 = vector.broadcast %15 : vector<8x1xf32> to vector<8x128xf32>
    %24 = arith.subf %9, %23 : vector<8x128xf32>
    %cst_15 = arith.constant 9.99999974E-6 : f32
    %25 = vector.broadcast %cst_15 : f32 to vector<8x1xf32>
    %26 = arith.addf %22, %25 : vector<8x1xf32>
    %27 = math.rsqrt %26 : vector<8x1xf32>
    %28 = vector.broadcast %27 : vector<8x1xf32> to vector<8x128xf32>
    %29 = arith.mulf %24, %28 : vector<8x128xf32>
    %30 = vector.broadcast %10 : vector<1x128xf32> to vector<8x128xf32>
    %31 = arith.mulf %29, %30 : vector<8x128xf32>
    %32 = vector.broadcast %11 : vector<1x128xf32> to vector<8x128xf32>
    %33 = arith.addf %31, %32 : vector<8x128xf32>
    %c0_16 = arith.constant 0 : index
    %c0_17 = arith.constant 0 : index
    %34 = vector.load %arg8[%c0_16, %c0_17] : memref<8x128xf32, #tpu.memory_space<vmem>>, vector<8x128xf32>
    %cst_18 = arith.constant 5.000000e-01 : f32
    %35 = vector.broadcast %cst_18 : f32 to vector<8x128xf32>
    %36 = arith.mulf %34, %35 : vector<8x128xf32>
    %37 = arith.addf %36, %33 : vector<8x128xf32>
    %cst_19 = arith.constant 1.000000e+00 : f32
    %38 = vector.broadcast %cst_19 : f32 to vector<8x128xf32>
    %39 = arith.cmpf oge, %37, %38 : vector<8x128xf32>
    %cst_20 = arith.constant 0.000000e+00 : f32
    %40 = vector.broadcast %cst_20 : f32 to vector<8x128xf32>
    %41 = arith.select %39, %40, %37 : vector<8x128xi1>, vector<8x128xf32>
    %c0_21 = arith.constant 0 : index
    %c0_22 = arith.constant 0 : index
    %42 = vector.load %arg8[%c0_21, %c0_22] : memref<8x128xf32, #tpu.memory_space<vmem>>, vector<8x128xf32>
    tpu.vector_store %arg8[%c0_21, %c0_22], %41 {strides = array<i32>} : memref<8x128xf32, #tpu.memory_space<vmem>>, vector<8x128xf32>,
    %43 = arith.extui %39 : vector<8x128xi1> to vector<8x128xi32>
    %44 = arith.sitofp %43 : vector<8x128xi32> to vector<8x128xf32>
    %45 = arith.truncf %44 : vector<8x128xf32> to vector<8x128xbf16>
    %c0_23 = arith.constant 0 : index
    %c0_24 = arith.constant 0 : index
    %c0_25 = arith.constant 0 : index
    %46 = vector.load %arg7[%c0_23, %c0_24, %c0_25] : memref<1x8x128xbf16, #tpu.memory_space<vmem>>, vector<1x8x128xbf16>
    %47 = vector.shape_cast %46 : vector<1x8x128xbf16> to vector<8x128xbf16>
    %48 = vector.shape_cast %45 : vector<8x128xbf16> to vector<1x8x128xbf16>
    tpu.vector_store %arg7[%c0_23, %c0_24, %c0_25], %48 {strides = array<i32>} : memref<1x8x128xbf16, #tpu.memory_space<vmem>>, vector<1x8x128xbf16>,
    return
  }
  func.func @transform_0(%arg0: i32, %arg1: i32) -> (i32, i32, i32) {
    %c0_i32 = arith.constant 0 : i32
    %c0_i32_0 = arith.constant 0 : i32
    return %arg1, %arg0, %c0_i32 : i32, i32, i32
  }
  func.func @transform_1(%arg0: i32, %arg1: i32) -> (i32, i32) {
    %c0_i32 = arith.constant 0 : i32
    %c0_i32_0 = arith.constant 0 : i32
    %c0_i32_1 = arith.constant 0 : i32
    return %c0_i32, %c0_i32_0 : i32, i32
  }
  func.func @transform_2(%arg0: i32, %arg1: i32) -> (i32, i32) {
    %c0_i32 = arith.constant 0 : i32
    %c0_i32_0 = arith.constant 0 : i32
    %c0_i32_1 = arith.constant 0 : i32
    return %c0_i32, %c0_i32_0 : i32, i32
  }
  func.func @transform_3(%arg0: i32, %arg1: i32) -> (i32, i32) {
    %c0_i32 = arith.constant 0 : i32
    %c0_i32_0 = arith.constant 0 : i32
    %c0_i32_1 = arith.constant 0 : i32
    return %c0_i32, %c0_i32_0 : i32, i32
  }
  func.func @transform_4(%arg0: i32, %arg1: i32) -> (i32, i32) {
    %c0_i32 = arith.constant 0 : i32
    %c0_i32_0 = arith.constant 0 : i32
    %c0_i32_1 = arith.constant 0 : i32
    return %c0_i32, %c0_i32_0 : i32, i32
  }
  func.func @transform_5(%arg0: i32, %arg1: i32) -> (i32, i32, i32) {
    %c0_i32 = arith.constant 0 : i32
    %c0_i32_0 = arith.constant 0 : i32
    return %arg1, %arg0, %c0_i32 : i32, i32, i32
  }
}

module attributes {stable_mosaic.version = 11 : i64} {
  func.func @_linear_ln_kernel(%arg0: i32, %arg1: memref<8x32xf32, #tpu.memory_space<vmem>>, %arg2: memref<32x32xf32, #tpu.memory_space<vmem>>, %arg3: memref<1x32xf32, #tpu.memory_space<vmem>>, %arg4: memref<1x32xf32, #tpu.memory_space<vmem>>, %arg5: memref<1x32xf32, #tpu.memory_space<vmem>>, %arg6: memref<8x32xf32, #tpu.memory_space<vmem>>) attributes {dimension_semantics = [#tpu.dimension_semantics<parallel>], iteration_bounds = array<i64: 2>, scalar_prefetch = 0 : i64, scratch_operands = 0 : i64, tpu.core_type = #tpu.core_type<tc>, window_params = [{transform_indices = @transform_0, window_bounds = array<i64: 8, 32>}, {pipeline_mode = #tpu.pipeline_mode<synchronous>, transform_indices = @transform_1, window_bounds = array<i64: 32, 32>}, {pipeline_mode = #tpu.pipeline_mode<synchronous>, transform_indices = @transform_2, window_bounds = array<i64: 1, 32>}, {pipeline_mode = #tpu.pipeline_mode<synchronous>, transform_indices = @transform_3, window_bounds = array<i64: 1, 32>}, {pipeline_mode = #tpu.pipeline_mode<synchronous>, transform_indices = @transform_4, window_bounds = array<i64: 1, 32>}, {transform_indices = @transform_5, window_bounds = array<i64: 8, 32>}]} {
    %c0 = arith.constant 0 : index
    %c0_0 = arith.constant 0 : index
    %0 = vector.load %arg1[%c0, %c0_0] : memref<8x32xf32, #tpu.memory_space<vmem>>, vector<8x32xf32>
    %c0_1 = arith.constant 0 : index
    %c0_2 = arith.constant 0 : index
    %1 = vector.load %arg2[%c0_1, %c0_2] : memref<32x32xf32, #tpu.memory_space<vmem>>, vector<32x32xf32>
    %cst = arith.constant dense<0.000000e+00> : vector<8x32xf32>
    %2 = tpu.matmul %0, %1, %cst {dimension_numbers = #tpu.dot_dimension_numbers<[1], [0], [0], [1], [0, 0, 1, 1], [], []>} : vector<8x32xf32>, vector<32x32xf32>, vector<8x32xf32> -> vector<8x32xf32>
    %c0_3 = arith.constant 0 : index
    %c0_4 = arith.constant 0 : index
    %3 = vector.load %arg3[%c0_3, %c0_4] : memref<1x32xf32, #tpu.memory_space<vmem>>, vector<1x32xf32>
    %4 = vector.broadcast %3 : vector<1x32xf32> to vector<8x32xf32>
    %5 = arith.addf %2, %4 : vector<8x32xf32>
    %c0_5 = arith.constant 0 : index
    %c0_6 = arith.constant 0 : index
    %6 = vector.load %arg4[%c0_5, %c0_6] : memref<1x32xf32, #tpu.memory_space<vmem>>, vector<1x32xf32>
    %c0_7 = arith.constant 0 : index
    %c0_8 = arith.constant 0 : index
    %7 = vector.load %arg5[%c0_7, %c0_8] : memref<1x32xf32, #tpu.memory_space<vmem>>, vector<1x32xf32>
    %cst_9 = arith.constant dense<0.000000e+00> : vector<8xf32>
    %8 = vector.multi_reduction <add>, %5, %cst_9 [1] : vector<8x32xf32> to vector<8xf32>
    %9 = vector.shape_cast %8 : vector<8xf32> to vector<8x1xf32>
    %cst_10 = arith.constant 3.200000e+01 : f32
    %10 = vector.broadcast %cst_10 : f32 to vector<8x1xf32>
    %11 = arith.divf %9, %10 : vector<8x1xf32>
    %12 = arith.mulf %5, %5 : vector<8x32xf32>
    %cst_11 = arith.constant dense<0.000000e+00> : vector<8xf32>
    %13 = vector.multi_reduction <add>, %12, %cst_11 [1] : vector<8x32xf32> to vector<8xf32>
    %14 = vector.shape_cast %13 : vector<8xf32> to vector<8x1xf32>
    %cst_12 = arith.constant 3.200000e+01 : f32
    %15 = vector.broadcast %cst_12 : f32 to vector<8x1xf32>
    %16 = arith.divf %14, %15 : vector<8x1xf32>
    %17 = arith.mulf %11, %11 : vector<8x1xf32>
    %18 = arith.subf %16, %17 : vector<8x1xf32>
    %19 = vector.broadcast %11 : vector<8x1xf32> to vector<8x32xf32>
    %20 = arith.subf %5, %19 : vector<8x32xf32>
    %cst_13 = arith.constant 9.99999974E-6 : f32
    %21 = vector.broadcast %cst_13 : f32 to vector<8x1xf32>
    %22 = arith.addf %18, %21 : vector<8x1xf32>
    %23 = math.rsqrt %22 : vector<8x1xf32>
    %24 = vector.broadcast %23 : vector<8x1xf32> to vector<8x32xf32>
    %25 = arith.mulf %20, %24 : vector<8x32xf32>
    %26 = vector.broadcast %6 : vector<1x32xf32> to vector<8x32xf32>
    %27 = arith.mulf %25, %26 : vector<8x32xf32>
    %28 = vector.broadcast %7 : vector<1x32xf32> to vector<8x32xf32>
    %29 = arith.addf %27, %28 : vector<8x32xf32>
    %c0_14 = arith.constant 0 : index
    %c0_15 = arith.constant 0 : index
    %30 = vector.load %arg6[%c0_14, %c0_15] : memref<8x32xf32, #tpu.memory_space<vmem>>, vector<8x32xf32>
    tpu.vector_store %arg6[%c0_14, %c0_15], %29 {strides = array<i32>} : memref<8x32xf32, #tpu.memory_space<vmem>>, vector<8x32xf32>,
    return
  }
  func.func @transform_0(%arg0: i32) -> (i32, i32) {
    %c0_i32 = arith.constant 0 : i32
    %c0_i32_0 = arith.constant 0 : i32
    return %arg0, %c0_i32 : i32, i32
  }
  func.func @transform_1(%arg0: i32) -> (i32, i32) {
    %c0_i32 = arith.constant 0 : i32
    %c0_i32_0 = arith.constant 0 : i32
    %c0_i32_1 = arith.constant 0 : i32
    return %c0_i32, %c0_i32_0 : i32, i32
  }
  func.func @transform_2(%arg0: i32) -> (i32, i32) {
    %c0_i32 = arith.constant 0 : i32
    %c0_i32_0 = arith.constant 0 : i32
    %c0_i32_1 = arith.constant 0 : i32
    return %c0_i32, %c0_i32_0 : i32, i32
  }
  func.func @transform_3(%arg0: i32) -> (i32, i32) {
    %c0_i32 = arith.constant 0 : i32
    %c0_i32_0 = arith.constant 0 : i32
    %c0_i32_1 = arith.constant 0 : i32
    return %c0_i32, %c0_i32_0 : i32, i32
  }
  func.func @transform_4(%arg0: i32) -> (i32, i32) {
    %c0_i32 = arith.constant 0 : i32
    %c0_i32_0 = arith.constant 0 : i32
    %c0_i32_1 = arith.constant 0 : i32
    return %c0_i32, %c0_i32_0 : i32, i32
  }
  func.func @transform_5(%arg0: i32) -> (i32, i32) {
    %c0_i32 = arith.constant 0 : i32
    %c0_i32_0 = arith.constant 0 : i32
    return %arg0, %c0_i32 : i32, i32
  }
}

module attributes {stable_mosaic.version = 11 : i64} {
  func.func @_lin_ln_lif_res_mean_kernel(%arg0: i32, %arg1: i32, %arg2: memref<1x8x128xbf16, #tpu.memory_space<vmem>>, %arg3: memref<128x32xbf16, #tpu.memory_space<vmem>>, %arg4: memref<1x32xf32, #tpu.memory_space<vmem>>, %arg5: memref<1x32xf32, #tpu.memory_space<vmem>>, %arg6: memref<1x32xf32, #tpu.memory_space<vmem>>, %arg7: memref<1x8x32xbf16, #tpu.memory_space<vmem>>, %arg8: memref<1x8x32xbf16, #tpu.memory_space<vmem>>, %arg9: memref<8x32xf32, #tpu.memory_space<vmem>>, %arg10: memref<8x32xf32, #tpu.memory_space<vmem>>) attributes {dimension_semantics = [#tpu.dimension_semantics<parallel>, #tpu.dimension_semantics<arbitrary>], iteration_bounds = array<i64: 2, 2>, scalar_prefetch = 0 : i64, scratch_operands = 1 : i64, tpu.core_type = #tpu.core_type<tc>, window_params = [{transform_indices = @transform_0, window_bounds = array<i64: 1, 8, 128>}, {pipeline_mode = #tpu.pipeline_mode<synchronous>, transform_indices = @transform_1, window_bounds = array<i64: 128, 32>}, {pipeline_mode = #tpu.pipeline_mode<synchronous>, transform_indices = @transform_2, window_bounds = array<i64: 1, 32>}, {pipeline_mode = #tpu.pipeline_mode<synchronous>, transform_indices = @transform_3, window_bounds = array<i64: 1, 32>}, {pipeline_mode = #tpu.pipeline_mode<synchronous>, transform_indices = @transform_4, window_bounds = array<i64: 1, 32>}, {transform_indices = @transform_5, window_bounds = array<i64: 1, 8, 32>}, {transform_indices = @transform_6, window_bounds = array<i64: 1, 8, 32>}, {transform_indices = @transform_7, window_bounds = array<i64: 8, 32>}]} {
    %c0_i32 = arith.constant 0 : i32
    %0 = arith.cmpi eq, %arg1, %c0_i32 : i32
    %1 = arith.extui %0 : i1 to i32
    %c0_i32_0 = arith.constant 0 : i32
    %2 = arith.cmpi ne, %1, %c0_i32_0 : i32
    scf.if %2 {
      %cst_34 = arith.constant 0.000000e+00 : f32
      %58 = vector.broadcast %cst_34 : f32 to vector<8x32xf32>
      %c0_35 = arith.constant 0 : index
      %c0_36 = arith.constant 0 : index
      %59 = vector.load %arg10[%c0_35, %c0_36] : memref<8x32xf32, #tpu.memory_space<vmem>>, vector<8x32xf32>
      tpu.vector_store %arg10[%c0_35, %c0_36], %58 {strides = array<i32>} : memref<8x32xf32, #tpu.memory_space<vmem>>, vector<8x32xf32>,
      %cst_37 = arith.constant 0.000000e+00 : f32
      %60 = vector.broadcast %cst_37 : f32 to vector<8x32xf32>
      %c0_38 = arith.constant 0 : index
      %c0_39 = arith.constant 0 : index
      %61 = vector.load %arg9[%c0_38, %c0_39] : memref<8x32xf32, #tpu.memory_space<vmem>>, vector<8x32xf32>
      tpu.vector_store %arg9[%c0_38, %c0_39], %60 {strides = array<i32>} : memref<8x32xf32, #tpu.memory_space<vmem>>, vector<8x32xf32>,
    } else {
    }
    %c0 = arith.constant 0 : index
    %c0_1 = arith.constant 0 : index
    %c0_2 = arith.constant 0 : index
    %3 = vector.load %arg2[%c0, %c0_1, %c0_2] : memref<1x8x128xbf16, #tpu.memory_space<vmem>>, vector<1x8x128xbf16>
    %4 = vector.shape_cast %3 : vector<1x8x128xbf16> to vector<8x128xbf16>
    %c0_3 = arith.constant 0 : index
    %c0_4 = arith.constant 0 : index
    %5 = vector.load %arg3[%c0_3, %c0_4] : memref<128x32xbf16, #tpu.memory_space<vmem>>, vector<128x32xbf16>
    %cst = arith.constant dense<0.000000e+00> : vector<8x32xf32>
    %6 = tpu.matmul %4, %5, %cst {dimension_numbers = #tpu.dot_dimension_numbers<[1], [0], [0], [1], [0, 0, 1, 1], [], []>} : vector<8x128xbf16>, vector<128x32xbf16>, vector<8x32xf32> -> vector<8x32xf32>
    %c0_5 = arith.constant 0 : index
    %c0_6 = arith.constant 0 : index
    %7 = vector.load %arg4[%c0_5, %c0_6] : memref<1x32xf32, #tpu.memory_space<vmem>>, vector<1x32xf32>
    %8 = vector.broadcast %7 : vector<1x32xf32> to vector<8x32xf32>
    %9 = arith.addf %6, %8 : vector<8x32xf32>
    %c0_7 = arith.constant 0 : index
    %c0_8 = arith.constant 0 : index
    %10 = vector.load %arg5[%c0_7, %c0_8] : memref<1x32xf32, #tpu.memory_space<vmem>>, vector<1x32xf32>
    %c0_9 = arith.constant 0 : index
    %c0_10 = arith.constant 0 : index
    %11 = vector.load %arg6[%c0_9, %c0_10] : memref<1x32xf32, #tpu.memory_space<vmem>>, vector<1x32xf32>
    %cst_11 = arith.constant dense<0.000000e+00> : vector<8xf32>
    %12 = vector.multi_reduction <add>, %9, %cst_11 [1] : vector<8x32xf32> to vector<8xf32>
    %13 = vector.shape_cast %12 : vector<8xf32> to vector<8x1xf32>
    %cst_12 = arith.constant 3.200000e+01 : f32
    %14 = vector.broadcast %cst_12 : f32 to vector<8x1xf32>
    %15 = arith.divf %13, %14 : vector<8x1xf32>
    %16 = arith.mulf %9, %9 : vector<8x32xf32>
    %cst_13 = arith.constant dense<0.000000e+00> : vector<8xf32>
    %17 = vector.multi_reduction <add>, %16, %cst_13 [1] : vector<8x32xf32> to vector<8xf32>
    %18 = vector.shape_cast %17 : vector<8xf32> to vector<8x1xf32>
    %cst_14 = arith.constant 3.200000e+01 : f32
    %19 = vector.broadcast %cst_14 : f32 to vector<8x1xf32>
    %20 = arith.divf %18, %19 : vector<8x1xf32>
    %21 = arith.mulf %15, %15 : vector<8x1xf32>
    %22 = arith.subf %20, %21 : vector<8x1xf32>
    %23 = vector.broadcast %15 : vector<8x1xf32> to vector<8x32xf32>
    %24 = arith.subf %9, %23 : vector<8x32xf32>
    %cst_15 = arith.constant 9.99999974E-6 : f32
    %25 = vector.broadcast %cst_15 : f32 to vector<8x1xf32>
    %26 = arith.addf %22, %25 : vector<8x1xf32>
    %27 = math.rsqrt %26 : vector<8x1xf32>
    %28 = vector.broadcast %27 : vector<8x1xf32> to vector<8x32xf32>
    %29 = arith.mulf %24, %28 : vector<8x32xf32>
    %30 = vector.broadcast %10 : vector<1x32xf32> to vector<8x32xf32>
    %31 = arith.mulf %29, %30 : vector<8x32xf32>
    %32 = vector.broadcast %11 : vector<1x32xf32> to vector<8x32xf32>
    %33 = arith.addf %31, %32 : vector<8x32xf32>
    %c0_16 = arith.constant 0 : index
    %c0_17 = arith.constant 0 : index
    %34 = vector.load %arg10[%c0_16, %c0_17] : memref<8x32xf32, #tpu.memory_space<vmem>>, vector<8x32xf32>
    %cst_18 = arith.constant 5.000000e-01 : f32
    %35 = vector.broadcast %cst_18 : f32 to vector<8x32xf32>
    %36 = arith.mulf %34, %35 : vector<8x32xf32>
    %37 = arith.addf %36, %33 : vector<8x32xf32>
    %cst_19 = arith.constant 1.000000e+00 : f32
    %38 = vector.broadcast %cst_19 : f32 to vector<8x32xf32>
    %39 = arith.cmpf oge, %37, %38 : vector<8x32xf32>
    %cst_20 = arith.constant 0.000000e+00 : f32
    %40 = vector.broadcast %cst_20 : f32 to vector<8x32xf32>
    %41 = arith.select %39, %40, %37 : vector<8x32xi1>, vector<8x32xf32>
    %c0_21 = arith.constant 0 : index
    %c0_22 = arith.constant 0 : index
    %42 = vector.load %arg10[%c0_21, %c0_22] : memref<8x32xf32, #tpu.memory_space<vmem>>, vector<8x32xf32>
    tpu.vector_store %arg10[%c0_21, %c0_22], %41 {strides = array<i32>} : memref<8x32xf32, #tpu.memory_space<vmem>>, vector<8x32xf32>,
    %c0_23 = arith.constant 0 : index
    %c0_24 = arith.constant 0 : index
    %c0_25 = arith.constant 0 : index
    %43 = vector.load %arg7[%c0_23, %c0_24, %c0_25] : memref<1x8x32xbf16, #tpu.memory_space<vmem>>, vector<1x8x32xbf16>
    %44 = vector.shape_cast %43 : vector<1x8x32xbf16> to vector<8x32xbf16>
    %45 = arith.extf %44 : vector<8x32xbf16> to vector<8x32xf32>
    %46 = arith.extui %39 : vector<8x32xi1> to vector<8x32xi32>
    %47 = arith.sitofp %46 : vector<8x32xi32> to vector<8x32xf32>
    %48 = arith.addf %45, %47 : vector<8x32xf32>
    %49 = arith.truncf %48 : vector<8x32xf32> to vector<8x32xbf16>
    %c0_26 = arith.constant 0 : index
    %c0_27 = arith.constant 0 : index
    %c0_28 = arith.constant 0 : index
    %50 = vector.load %arg8[%c0_26, %c0_27, %c0_28] : memref<1x8x32xbf16, #tpu.memory_space<vmem>>, vector<1x8x32xbf16>
    %51 = vector.shape_cast %50 : vector<1x8x32xbf16> to vector<8x32xbf16>
    %52 = vector.shape_cast %49 : vector<8x32xbf16> to vector<1x8x32xbf16>
    tpu.vector_store %arg8[%c0_26, %c0_27, %c0_28], %52 {strides = array<i32>} : memref<1x8x32xbf16, #tpu.memory_space<vmem>>, vector<1x8x32xbf16>,
    %c0_29 = arith.constant 0 : index
    %c0_30 = arith.constant 0 : index
    %53 = vector.load %arg9[%c0_29, %c0_30] : memref<8x32xf32, #tpu.memory_space<vmem>>, vector<8x32xf32>
    %cst_31 = arith.constant 5.000000e-01 : f32
    %54 = vector.broadcast %cst_31 : f32 to vector<8x32xf32>
    %55 = arith.mulf %48, %54 : vector<8x32xf32>
    %56 = arith.addf %53, %55 : vector<8x32xf32>
    %c0_32 = arith.constant 0 : index
    %c0_33 = arith.constant 0 : index
    %57 = vector.load %arg9[%c0_32, %c0_33] : memref<8x32xf32, #tpu.memory_space<vmem>>, vector<8x32xf32>
    tpu.vector_store %arg9[%c0_32, %c0_33], %56 {strides = array<i32>} : memref<8x32xf32, #tpu.memory_space<vmem>>, vector<8x32xf32>,
    return
  }
  func.func @transform_0(%arg0: i32, %arg1: i32) -> (i32, i32, i32) {
    %c0_i32 = arith.constant 0 : i32
    %c0_i32_0 = arith.constant 0 : i32
    return %arg1, %arg0, %c0_i32 : i32, i32, i32
  }
  func.func @transform_1(%arg0: i32, %arg1: i32) -> (i32, i32) {
    %c0_i32 = arith.constant 0 : i32
    %c0_i32_0 = arith.constant 0 : i32
    %c0_i32_1 = arith.constant 0 : i32
    return %c0_i32, %c0_i32_0 : i32, i32
  }
  func.func @transform_2(%arg0: i32, %arg1: i32) -> (i32, i32) {
    %c0_i32 = arith.constant 0 : i32
    %c0_i32_0 = arith.constant 0 : i32
    %c0_i32_1 = arith.constant 0 : i32
    return %c0_i32, %c0_i32_0 : i32, i32
  }
  func.func @transform_3(%arg0: i32, %arg1: i32) -> (i32, i32) {
    %c0_i32 = arith.constant 0 : i32
    %c0_i32_0 = arith.constant 0 : i32
    %c0_i32_1 = arith.constant 0 : i32
    return %c0_i32, %c0_i32_0 : i32, i32
  }
  func.func @transform_4(%arg0: i32, %arg1: i32) -> (i32, i32) {
    %c0_i32 = arith.constant 0 : i32
    %c0_i32_0 = arith.constant 0 : i32
    %c0_i32_1 = arith.constant 0 : i32
    return %c0_i32, %c0_i32_0 : i32, i32
  }
  func.func @transform_5(%arg0: i32, %arg1: i32) -> (i32, i32, i32) {
    %c0_i32 = arith.constant 0 : i32
    %c0_i32_0 = arith.constant 0 : i32
    return %arg1, %arg0, %c0_i32 : i32, i32, i32
  }
  func.func @transform_6(%arg0: i32, %arg1: i32) -> (i32, i32, i32) {
    %c0_i32 = arith.constant 0 : i32
    %c0_i32_0 = arith.constant 0 : i32
    return %arg1, %arg0, %c0_i32 : i32, i32, i32
  }
  func.func @transform_7(%arg0: i32, %arg1: i32) -> (i32, i32) {
    %c0_i32 = arith.constant 0 : i32
    %c0_i32_0 = arith.constant 0 : i32
    return %arg0, %c0_i32 : i32, i32
  }
}

module attributes {stable_mosaic.version = 11 : i64} {
  func.func @_linear_kernel(%arg0: i32, %arg1: memref<4x32xf32, #tpu.memory_space<vmem>>, %arg2: memref<32x2xf32, #tpu.memory_space<vmem>>, %arg3: memref<1x2xf32, #tpu.memory_space<vmem>>, %arg4: memref<4x2xf32, #tpu.memory_space<vmem>>) attributes {dimension_semantics = [#tpu.dimension_semantics<parallel>], iteration_bounds = array<i64: 1>, scalar_prefetch = 0 : i64, scratch_operands = 0 : i64, tpu.core_type = #tpu.core_type<tc>, window_params = [{transform_indices = @transform_0, window_bounds = array<i64: 4, 32>}, {pipeline_mode = #tpu.pipeline_mode<synchronous>, transform_indices = @transform_1, window_bounds = array<i64: 32, 2>}, {pipeline_mode = #tpu.pipeline_mode<synchronous>, transform_indices = @transform_2, window_bounds = array<i64: 1, 2>}, {transform_indices = @transform_3, window_bounds = array<i64: 4, 2>}]} {
    %c0 = arith.constant 0 : index
    %c0_0 = arith.constant 0 : index
    %0 = vector.load %arg1[%c0, %c0_0] : memref<4x32xf32, #tpu.memory_space<vmem>>, vector<4x32xf32>
    %c0_1 = arith.constant 0 : index
    %c0_2 = arith.constant 0 : index
    %1 = vector.load %arg2[%c0_1, %c0_2] : memref<32x2xf32, #tpu.memory_space<vmem>>, vector<32x2xf32>
    %cst = arith.constant dense<0.000000e+00> : vector<4x2xf32>
    %2 = tpu.matmul %0, %1, %cst {dimension_numbers = #tpu.dot_dimension_numbers<[1], [0], [0], [1], [0, 0, 1, 1], [], []>} : vector<4x32xf32>, vector<32x2xf32>, vector<4x2xf32> -> vector<4x2xf32>
    %c0_3 = arith.constant 0 : index
    %c0_4 = arith.constant 0 : index
    %3 = vector.load %arg3[%c0_3, %c0_4] : memref<1x2xf32, #tpu.memory_space<vmem>>, vector<1x2xf32>
    %4 = vector.broadcast %3 : vector<1x2xf32> to vector<4x2xf32>
    %5 = arith.addf %2, %4 : vector<4x2xf32>
    %c0_5 = arith.constant 0 : index
    %c0_6 = arith.constant 0 : index
    %6 = vector.load %arg4[%c0_5, %c0_6] : memref<4x2xf32, #tpu.memory_space<vmem>>, vector<4x2xf32>
    tpu.vector_store %arg4[%c0_5, %c0_6], %5 {strides = array<i32>} : memref<4x2xf32, #tpu.memory_space<vmem>>, vector<4x2xf32>,
    return
  }
  func.func @transform_0(%arg0: i32) -> (i32, i32) {
    %c0_i32 = arith.constant 0 : i32
    %c0_i32_0 = arith.constant 0 : i32
    return %arg0, %c0_i32 : i32, i32
  }
  func.func @transform_1(%arg0: i32) -> (i32, i32) {
    %c0_i32 = arith.constant 0 : i32
    %c0_i32_0 = arith.constant 0 : i32
    %c0_i32_1 = arith.constant 0 : i32
    return %c0_i32, %c0_i32_0 : i32, i32
  }
  func.func @transform_2(%arg0: i32) -> (i32, i32) {
    %c0_i32 = arith.constant 0 : i32
    %c0_i32_0 = arith.constant 0 : i32
    %c0_i32_1 = arith.constant 0 : i32
    return %c0_i32, %c0_i32_0 : i32, i32
  }
  func.func @transform_3(%arg0: i32) -> (i32, i32) {
    %c0_i32 = arith.constant 0 : i32
    %c0_i32_0 = arith.constant 0 : i32
    return %arg0, %c0_i32 : i32, i32
  }
}

module attributes {stable_mosaic.version = 11 : i64} {
  func.func @_ln_kernel(%arg0: i32, %arg1: memref<16x32xbf16, #tpu.memory_space<vmem>>, %arg2: memref<1x32xf32, #tpu.memory_space<vmem>>, %arg3: memref<1x32xf32, #tpu.memory_space<vmem>>, %arg4: memref<16x32xf32, #tpu.memory_space<vmem>>) attributes {dimension_semantics = [#tpu.dimension_semantics<parallel>], iteration_bounds = array<i64: 2>, scalar_prefetch = 0 : i64, scratch_operands = 0 : i64, tpu.core_type = #tpu.core_type<tc>, window_params = [{transform_indices = @transform_0, window_bounds = array<i64: 16, 32>}, {pipeline_mode = #tpu.pipeline_mode<synchronous>, transform_indices = @transform_1, window_bounds = array<i64: 1, 32>}, {pipeline_mode = #tpu.pipeline_mode<synchronous>, transform_indices = @transform_2, window_bounds = array<i64: 1, 32>}, {transform_indices = @transform_3, window_bounds = array<i64: 16, 32>}]} {
    %c0 = arith.constant 0 : index
    %c0_0 = arith.constant 0 : index
    %0 = vector.load %arg1[%c0, %c0_0] : memref<16x32xbf16, #tpu.memory_space<vmem>>, vector<16x32xbf16>
    %1 = arith.extf %0 : vector<16x32xbf16> to vector<16x32xf32>
    %c0_1 = arith.constant 0 : index
    %c0_2 = arith.constant 0 : index
    %2 = vector.load %arg2[%c0_1, %c0_2] : memref<1x32xf32, #tpu.memory_space<vmem>>, vector<1x32xf32>
    %c0_3 = arith.constant 0 : index
    %c0_4 = arith.constant 0 : index
    %3 = vector.load %arg3[%c0_3, %c0_4] : memref<1x32xf32, #tpu.memory_space<vmem>>, vector<1x32xf32>
    %cst = arith.constant dense<0.000000e+00> : vector<16xf32>
    %4 = vector.multi_reduction <add>, %1, %cst [1] : vector<16x32xf32> to vector<16xf32>
    %5 = vector.shape_cast %4 : vector<16xf32> to vector<16x1xf32>
    %cst_5 = arith.constant 3.200000e+01 : f32
    %6 = vector.broadcast %cst_5 : f32 to vector<16x1xf32>
    %7 = arith.divf %5, %6 : vector<16x1xf32>
    %8 = arith.mulf %1, %1 : vector<16x32xf32>
    %cst_6 = arith.constant dense<0.000000e+00> : vector<16xf32>
    %9 = vector.multi_reduction <add>, %8, %cst_6 [1] : vector<16x32xf32> to vector<16xf32>
    %10 = vector.shape_cast %9 : vector<16xf32> to vector<16x1xf32>
    %cst_7 = arith.constant 3.200000e+01 : f32
    %11 = vector.broadcast %cst_7 : f32 to vector<16x1xf32>
    %12 = arith.divf %10, %11 : vector<16x1xf32>
    %13 = arith.mulf %7, %7 : vector<16x1xf32>
    %14 = arith.subf %12, %13 : vector<16x1xf32>
    %15 = vector.broadcast %7 : vector<16x1xf32> to vector<16x32xf32>
    %16 = arith.subf %1, %15 : vector<16x32xf32>
    %cst_8 = arith.constant 9.99999974E-6 : f32
    %17 = vector.broadcast %cst_8 : f32 to vector<16x1xf32>
    %18 = arith.addf %14, %17 : vector<16x1xf32>
    %19 = math.rsqrt %18 : vector<16x1xf32>
    %20 = vector.broadcast %19 : vector<16x1xf32> to vector<16x32xf32>
    %21 = arith.mulf %16, %20 : vector<16x32xf32>
    %22 = vector.broadcast %2 : vector<1x32xf32> to vector<16x32xf32>
    %23 = arith.mulf %21, %22 : vector<16x32xf32>
    %24 = vector.broadcast %3 : vector<1x32xf32> to vector<16x32xf32>
    %25 = arith.addf %23, %24 : vector<16x32xf32>
    %c0_9 = arith.constant 0 : index
    %c0_10 = arith.constant 0 : index
    %26 = vector.load %arg4[%c0_9, %c0_10] : memref<16x32xf32, #tpu.memory_space<vmem>>, vector<16x32xf32>
    tpu.vector_store %arg4[%c0_9, %c0_10], %25 {strides = array<i32>} : memref<16x32xf32, #tpu.memory_space<vmem>>, vector<16x32xf32>,
    return
  }
  func.func @transform_0(%arg0: i32) -> (i32, i32) {
    %c0_i32 = arith.constant 0 : i32
    %c0_i32_0 = arith.constant 0 : i32
    return %arg0, %c0_i32 : i32, i32
  }
  func.func @transform_1(%arg0: i32) -> (i32, i32) {
    %c0_i32 = arith.constant 0 : i32
    %c0_i32_0 = arith.constant 0 : i32
    %c0_i32_1 = arith.constant 0 : i32
    return %c0_i32, %c0_i32_0 : i32, i32
  }
  func.func @transform_2(%arg0: i32) -> (i32, i32) {
    %c0_i32 = arith.constant 0 : i32
    %c0_i32_0 = arith.constant 0 : i32
    %c0_i32_1 = arith.constant 0 : i32
    return %c0_i32, %c0_i32_0 : i32, i32
  }
  func.func @transform_3(%arg0: i32) -> (i32, i32) {
    %c0_i32 = arith.constant 0 : i32
    %c0_i32_0 = arith.constant 0 : i32
    return %arg0, %c0_i32 : i32, i32
  }
}

</mosaic_0001>

<bundles_post_ra>
// kernel: spikformer_forward.17
= control target key start
LH: loop header
LB: loop body
LE: loop exit
PB: predicated region body
PF: predicated region fallthrough
CT: control target
= control target key end

     0   :  { %s606_s18 = smov 0   ;;  %s608_s19 = smov 0   ;;  %s675_s0 = inlined_call_operand.vmem [shape: bf16[2,16,32], index: 0, kind: input, shape index: {}]   ;;  %s676_s1 = inlined_call_operand.vmem [shape: bf16[32,128], index: 1, kind: input, shape index: {}]   ;;  %s677_s2 = inlined_call_operand.vmem [shape: f32[1,128], index: 2, kind: input, shape index: {}]   ;;  %s678_s3 = inlined_call_operand.vmem [shape: f32[1,128], index: 3, kind: input, shape index: {}]   ;;  %s679_s4 = inlined_call_operand.vmem [shape: f32[1,128], index: 4, kind: input, shape index: {}]   ;;  %s680_s5 = inlined_call_operand.vmem [shape: bf16[2,16,128], index: 5, kind: output, shape index: {}]  }
   0x1   :  { %s610_s20 = smov 0   ;;  %s612_s21 = smov 0  }
   0x2   :  { %s614_s22 = smov 0  }
   0x3 LB: > { %s24_s23 = sadd.s32 1, %s563_s20  ;;  %s27_s24 = sadd.s32 1, %s567_s21  ;;  %s571_s22 = sphi %s614_s22, %s15_s22   ;;  %s567_s21 = sphi %s612_s21, %s684_s21   ;;  %s563_s20 = sphi %s610_s20, %s683_s20   ;;  %s559_s19 = sphi %s608_s19, %s682_s19   ;;  %s555_s18 = sphi %s606_s18, %s681_s18  }
   0x4   : > { %p25_p0 = scmp.ge.s32.totalorder %s24_s23, 2  ;;  %p460_p1 = scmp.ge.s32.totalorder %s571_s22, 1 }
   0x5   : > { %p206_p2 = scmp.lt.s32.totalorder %s571_s22, 5 }
   0x6   : > { %s686_s23 = smov (%p25_p0, %s24_s23), 0  ;;  %s688_s24 = smov (!%p25_p0, %s27_s24), %s567_s21 }
   0x7   : > { %p207_p3 = pnand %p460_p1, %p206_p2  ;;  %p29_p4 = scmp.ge.s32.totalorder %s688_s24, 2 }
   0x8   : > { %p240_p5 = scmp.lt.s32.totalorder (!%p207_p3), %s555_s18, 1  ;;  %p242_p6 = scmp.lt.s32.totalorder (!%p207_p3), %s559_s19, 1 }
   0x9   : > { %s690_s24 = smov (%p29_p4, %s688_s24), 0  ;;  %210 = sbr.rel (%p207_p3) target bundleno = 423 (0x1a7), region = 40 }
   0xa   : > { %p465_p7 = scmp.ne.s32.totalorder (!%p207_p3), %s555_s18, 0 }
  0x10   : > { %s241_s25 = scalar_select %p240_p5, %s555_s18, 1 }
  0x11   : > { %s692_s19 = smov (!%p242_p6, %s559_s19), 1  ;;  %260 = sbr.rel (%p465_p7) target bundleno = 24 (0x18), region = 44 }
  0x12   : > { %s461_s26 = sshll.u32 %s241_s25, 1  ;;  %v573_v0 = vmov (!%p465_p7), 0.0  }
  0x13   : > { %s245_s27 = sadd.s32 %s461_s26, %s692_s19  ;;  %261 = vst [vmem:[#allocation2] sm:$0xff] (!%p465_p7), %v573_v0 }
  0x14   : > { %s462_s28 = sshll.u32 %s245_s27, 2 }
  0x15   : > { %s247_s6 = scalar_lea.vmem %s675_s0, %s462_s28  ;;  %s642_s9 = scalar_lea.vmem %s680_s5, %s462_s28 }
  0x18 PF: > { %v529_v1 = vld [vmem:[%s676_s1] sm:$0xff]   ;;  %v574_v2 = vmov 0.0   ;;  %v530_v3 = vld [vmem:[%s676_s1 + $0x8] sm:$0xff]   ;;  %vm575_vm0 = vmmov 0   ;;  %vm286_vm1 = vcmask 261120  }
  0x19   : > { %478 = vmatprep.subr.bf16.mxu0 %v574_v2  ;;  %482 = vmatprep.mubr.msk.bf16.mxu0 %vm575_vm0, %v574_v2  ;;  %v262_v4 = vld [vmem:[%s247_s6] sm:$0xf] }
  0x1a   : > { %479 = vmatpush3.bf16.msra.mxu0 %v529_v1  ;;  %v466_v5 = vld [vmem:[%s677_s2] ss:$0 sm:$0xff] }
  0x1b   : > { %480 = vmatprep.subr.bf16.mxu0 %v574_v2  ;;  %v470_v21 = vld [vmem:[%s678_s3] ss:$0 sm:$0xff] }
  0x1c   : > { %v360_v22 = vld [vmem:[#allocation2] sm:$0xff] }
  0x1d   : > { %v471_v24 = vld [vmem:[%s679_s4] ss:$0 sm:$0xff]  ;;  %v361_v25 = vmul.f32 0.5, %v360_v22 }
  0x1e   : > { %481 = vmatpush3.bf16.msra.mxu0 %v530_v3 }
  0x21   : > { %483 = vmatmul.mubr.msk.bf16.vlgmr.msra.gmra.mrb[0].mxu0 %vm286_vm1, %v262_v4 }
  0xf4   : > { %v324_v6 = vpop.f32.mrb[0].mxu0 }
  0xf5   : > { %v325_v7 = vadd.f32 %v466_v5, %v324_v6  ;;  %v484_v8 = vpop.f32.mrb[1].mxu0 }
  0xf6   : > { %v327_v9 = vpop.f32.mrb[2].mxu0 }
  0xf7   : > { %332 = vadd.xlane.f32.xlu0 %v325_v7  ;;  %v485_v10 = vpop.f32.mrb[3].mxu0  ;;  %v336_v11 = vmul.f32 %v325_v7, %v325_v7 }
  0xfb   : > { %337 = vadd.xlane.f32.xlu0 %v336_v11 }
 0x184   : > { %v333_v12 = vpop.xlane.xlu0 %332 }
 0x185   : > { %v335_v13 = vmul.f32 0.0078125, %v333_v12 }
 0x187   : > { %v340_v15 = vmul.f32 %v335_v13, %v335_v13  ;;  %v342_v19 = vsub.f32 %v325_v7, %v335_v13 }
 0x188   : > { %v338_v14 = vpop.xlane.xlu0 %337 }
 0x189   : > { %v339_v16 = vmul.f32 0.0078125, %v338_v14 }
 0x18b   : > { %v341_v17 = vsub.f32 %v339_v16, %v340_v15 }
 0x18d   : > { %v343_v18 = vadd.f32 1e-05, %v341_v17 }
 0x18f   : > { %531 = vrsqrt.f32 %v343_v18 }
 0x199   : > { %v532_v20 = vpop.eup %531 }
 0x19a   : > { %v345_v23 = vmul.f32 %v532_v20, %v342_v19 }
 0x19c   : > { %v352_v26 = vmul.f32 %v470_v21, %v345_v23 }
 0x19e   : > { %v359_v27 = vadd.f32 %v471_v24, %v352_v26 }
 0x1a0   : > { %v362_v28 = vadd.f32 %v361_v25, %v359_v27 }
 0x1a2   : > { %vm363_vm2 = vcmp.ge.f32.partialorder %v362_v28, 1.0 }
 0x1a3   : > { %v364_v29 = vsel %vm363_vm2, 0.0, %v362_v28  ;;  %v472_v30 = vsel %vm363_vm2, 1.0, %v574_v2 }
 0x1a4   : > { %365 = vst [vmem:[#allocation2] sm:$0xff] %v364_v29  ;;  %v368_v31 = vpack.c.bf16 %v472_v30, %v472_v30 }
 0x1a6   : > { %369 = vst [vmem:[%s642_s9] sm:$0xf] %v368_v31 }
 0x1a7 PF: > { %s15_s22 = sadd.s32 1, %s571_s22   ;;  %s681_s18 = smov %s563_s20 }
 0x1a8   : > { %p12_p8 = scmp.ge.s32.totalorder %s15_s22, 6   ;;  %s682_s19 = smov %s567_s21 }
 0x1a9   : > { %s683_s20 = smov %s686_s23  ;;  %s684_s21 = smov %s690_s24 }
 0x1aa   :  { %14 = sbr.rel (!%p12_p8) target bundleno = 3 (0x3), region = 74 }

// kernel: spikformer_forward.14
= control target key start
LH: loop header
LB: loop body
LE: loop exit
PB: predicated region body
PF: predicated region fallthrough
CT: control target
= control target key end

     0   :  { %s682_s18 = smov 0   ;;  %s684_s19 = smov 0   ;;  %s776_s0 = inlined_call_operand.vmem [shape: bf16[2,16,32], index: 0, kind: input, shape index: {}]   ;;  %s777_s1 = inlined_call_operand.vmem [shape: bf16[32,96], index: 1, kind: input, shape index: {}]   ;;  %s778_s2 = inlined_call_operand.vmem [shape: f32[1,96], index: 2, kind: input, shape index: {}]   ;;  %s779_s3 = inlined_call_operand.vmem [shape: f32[1,96], index: 3, kind: input, shape index: {}]   ;;  %s780_s4 = inlined_call_operand.vmem [shape: f32[1,96], index: 4, kind: input, shape index: {}]   ;;  %s781_s5 = inlined_call_operand.vmem [shape: bf16[2,16,96], index: 5, kind: output, shape index: {}]  }
   0x1   :  { %s686_s20 = smov 0   ;;  %s688_s21 = smov 0  }
   0x2   :  { %s690_s22 = smov 0  }
   0x3 LB: > { %s24_s23 = sadd.s32 1, %s637_s20  ;;  %s27_s24 = sadd.s32 1, %s641_s21  ;;  %s645_s22 = sphi %s690_s22, %s15_s22   ;;  %s641_s21 = sphi %s688_s21, %s785_s21   ;;  %s637_s20 = sphi %s686_s20, %s784_s20   ;;  %s633_s19 = sphi %s684_s19, %s783_s19   ;;  %s629_s18 = sphi %s682_s18, %s782_s18  }
   0x4   : > { %p25_p0 = scmp.ge.s32.totalorder %s24_s23, 2  ;;  %p526_p1 = scmp.ge.s32.totalorder %s645_s22, 1 }
   0x5   : > { %p206_p2 = scmp.lt.s32.totalorder %s645_s22, 5 }
   0x6   : > { %s787_s23 = smov (%p25_p0, %s24_s23), 0  ;;  %s789_s24 = smov (!%p25_p0, %s27_s24), %s641_s21 }
   0x7   : > { %p207_p3 = pnand %p526_p1, %p206_p2  ;;  %p29_p4 = scmp.ge.s32.totalorder %s789_s24, 2 }
   0x8   : > { %p240_p5 = scmp.lt.s32.totalorder (!%p207_p3), %s629_s18, 1  ;;  %p242_p6 = scmp.lt.s32.totalorder (!%p207_p3), %s633_s19, 1 }
   0x9   : > { %s791_s24 = smov (%p29_p4, %s789_s24), 0  ;;  %210 = sbr.rel (%p207_p3) target bundleno = 544 (0x220), region = 40 }
   0xa   : > { %p531_p7 = scmp.ne.s32.totalorder (!%p207_p3), %s629_s18, 0 }
  0x10   : > { %s241_s25 = scalar_select %p240_p5, %s629_s18, 1 }
  0x11   : > { %s793_s19 = smov (!%p242_p6, %s633_s19), 1  ;;  %260 = sbr.rel (%p531_p7) target bundleno = 24 (0x18), region = 44 }
  0x12   : > { %s527_s26 = sshll.u32 %s241_s25, 1  ;;  %vm261_vm0 = vcmask (!%p531_p7), 785408   ;;  %v647_v0 = vmov (!%p531_p7), 0.0  }
  0x13   : > { %s245_s27 = sadd.s32 %s527_s26, %s793_s19  ;;  %262 = vst.msk [vmem:[#allocation2] sm:$0xff] (!%p531_p7), %vm261_vm0, %v647_v0 }
  0x14   : > { %s528_s28 = sshll.u32 %s245_s27, 2 }
  0x15   : > { %s247_s6 = scalar_lea.vmem %s776_s0, %s528_s28  ;;  %s718_s9 = scalar_lea.vmem %s781_s5, %s528_s28 }
  0x18 PF: > { %v599_v1 = vld [vmem:[%s777_s1] sm:$0xff]   ;;  %v648_v2 = vmov 0.0   ;;  %v600_v3 = vld [vmem:[%s777_s1 + $0x8] sm:$0xff]   ;;  %vm649_vm1 = vmmov 0   ;;  %vm287_vm2 = vcmask 261120   ;;  %s650_s16 = smov 96  }
  0x19   : > { %546 = vmatprep.subr.bf16.mxu0 %v648_v2  ;;  %550 = vmatprep.mubr.msk.bf16.mxu0 %vm649_vm1, %v648_v2  ;;  %v263_v4 = vld [vmem:[%s247_s6] sm:$0xf]  ;;  %s651_s17 = smov 64   ;;  %vm427_vm5 = vcmask 523264   ;;  %vm429_vm6 = vcmask 785408   ;;  %vm434_vm8 = vcmask 781312  }
  0x1a   : > { %547 = vmatpush3.bf16.msra.mxu0 %v599_v1  ;;  %v532_v5 = vld [vmem:[%s778_s2] ss:$0 sm:$0xff] }
  0x1b   : > { %548 = vmatprep.subr.bf16.mxu0 %v648_v2  ;;  %v536_v46 = vld [vmem:[%s779_s3] ss:$0 sm:$0xff] }
  0x1c   : > { %v537_v48 = vld [vmem:[%s780_s4] ss:$0 sm:$0xff] }
  0x1d   : > { %v363_v49 = vld [vmem:[#allocation2] sm:$0xff] }
  0x1e   : > { %549 = vmatpush3.bf16.msra.mxu0 %v600_v3  ;;  %v364_v53 = vmul.f32 0.5, %v363_v49 }
  0x21   : > { %551 = vmatmul.mubr.msk.bf16.vlgmr.msra.gmra.mrb[0].mxu0 %vm287_vm2, %v263_v4 }
  0xf4   : > { %v325_v6 = vpop.f32.mrb[0].mxu0 }
  0xf5   : > { %v733_v7 = vadd.f32 %v532_v5, %v325_v6  ;;  %v552_v8 = vpop.f32.mrb[1].mxu0 }
  0xf6   : > { %v328_v9 = vpop.f32.mrb[2].mxu0 }
  0xf7   : > { %371 = vrot.lane.b32.xlu0 %v733_v7, %s650_s16  ;;  %v553_v10 = vpop.f32.mrb[3].mxu0  ;;  %v338_v11 = vmul.f32 %v733_v7, %v733_v7  ;;  %v333_v12 = vsel %vm287_vm2, %v733_v7, 0.0 }
  0xf9   : > { %379 = vrot.lane.b32.xlu1 %v338_v11, %s650_s16  ;;  %v339_v13 = vsel %vm287_vm2, %v338_v11, 0.0 }
  0xfb   : > { %399 = vrot.lane.b32.xlu0 %v733_v7, %s651_s17 }
  0xfd   : > { %406 = vrot.lane.b32.xlu1 %v338_v11, %s651_s17 }
 0x11a   : > { %334 = vadd.xlane.f32.xlu0 %v333_v12 }
 0x11e   : > { %340 = vadd.xlane.f32.xlu0 %v339_v13 }
 0x169   : > { %v372_v14 = vpop.permute.xlu0 %371 }
 0x16a   : > { %v374_v15 = vsel %vm287_vm2, %v372_v14, 0.0 }
 0x16b   : > { %375 = vadd.xlane.f32.xlu1 %v374_v15  ;;  %v380_v16 = vpop.permute.xlu1 %379 }
 0x16c   : > { %v382_v18 = vsel %vm287_vm2, %v380_v16, 0.0 }
 0x16d   : > { %v400_v17 = vpop.permute.xlu0 %399 }
 0x16e   : > { %v402_v19 = vsel %vm287_vm2, %v400_v17, 0.0 }
 0x16f   : > { %383 = vadd.xlane.f32.xlu1 %v382_v18  ;;  %v407_v20 = vpop.permute.xlu1 %406  ;;  %403 = vadd.xlane.f32.xlu0 %v402_v19 }
 0x170   : > { %v409_v21 = vsel %vm287_vm2, %v407_v20, 0.0 }
 0x173   : > { %410 = vadd.xlane.f32.xlu0 %v409_v21 }
 0x1a7   : > { %v335_v22 = vpop.xlane.xlu0 %334 }
 0x1a8   : > { %v337_v24 = vmul.f32 0.03125, %v335_v22 }
 0x1aa   : > { %v343_v26 = vmul.f32 %v337_v24, %v337_v24  ;;  %v345_v43 = vsub.f32 %v733_v7, %v337_v24 }
 0x1ab   : > { %v341_v23 = vpop.xlane.xlu0 %340 }
 0x1ac   : > { %v342_v25 = vmul.f32 0.03125, %v341_v23 }
 0x1ae   : > { %v344_v27 = vsub.f32 %v342_v25, %v343_v26 }
 0x1b0   : > { %v346_v28 = vadd.f32 1e-05, %v344_v27 }
 0x1b2   : > { %601 = vrsqrt.f32 %v346_v28 }
 0x1bc   : > { %v602_v42 = vpop.eup %601 }
 0x1bd   : > { %v348_v45 = vmul.f32 %v602_v42, %v345_v43 }
 0x1bf   : > { %v355_v47 = vmul.f32 %v536_v46, %v348_v45 }
 0x1c1   : > { %v362_v54 = vadd.f32 %v537_v48, %v355_v47 }
 0x1c3   : > { %v365_v60 = vadd.f32 %v364_v53, %v362_v54 }
 0x1c5   : > { %vm366_vm4 = vcmp.ge.f32.partialorder %v365_v60, 1.0 }
 0x1c6   : > { %v367_v4 = vsel %vm366_vm4, 0.0, %v365_v60  ;;  %v538_v5 = vsel %vm366_vm4, 1.0, %v648_v2 }
 0x1f8   : > { %v376_v29 = vpop.xlane.xlu1 %375 }
 0x1f9   : > { %v377_v30 = vmul.f32 0.03125, %v376_v29 }
 0x1fb   : > { %v386_v33 = vmul.f32 %v377_v30, %v377_v30  ;;  %v388_v50 = vsub.f32 %v733_v7, %v377_v30 }
 0x1fc   : > { %v384_v31 = vpop.xlane.xlu1 %383  ;;  %v404_v32 = vpop.xlane.xlu0 %403 }
 0x1fd   : > { %v385_v34 = vmul.f32 0.03125, %v384_v31  ;;  %v405_v35 = vmul.f32 0.03125, %v404_v32 }
 0x1ff   : > { %v387_v36 = vsub.f32 %v385_v34, %v386_v33  ;;  %v413_v39 = vmul.f32 %v405_v35, %v405_v35  ;;  %v415_v56 = vsub.f32 %v733_v7, %v405_v35 }
 0x200   : > { %v411_v37 = vpop.xlane.xlu0 %410 }
 0x201   : > { %v389_v38 = vadd.f32 1e-05, %v387_v36  ;;  %v412_v40 = vmul.f32 0.03125, %v411_v37 }
 0x203   : > { %603 = vrsqrt.f32 %v389_v38  ;;  %v414_v41 = vsub.f32 %v412_v40, %v413_v39 }
 0x205   : > { %v416_v44 = vadd.f32 1e-05, %v414_v41 }
 0x207   : > { %605 = vrsqrt.f32 %v416_v44 }
 0x20d   : > { %v604_v51 = vpop.eup %603 }
 0x20e   : > { %v391_v52 = vmul.f32 %v604_v51, %v388_v50 }
 0x210   : > { %v392_v55 = vmul.f32 %v536_v46, %v391_v52 }
 0x211   : > { %v606_v57 = vpop.eup %605 }
 0x212   : > { %v393_v58 = vadd.f32 %v537_v48, %v392_v55  ;;  %v418_v59 = vmul.f32 %v606_v57, %v415_v56 }
 0x214   : > { %v394_v61 = vadd.f32 %v393_v58, %v364_v53  ;;  %v419_v62 = vmul.f32 %v536_v46, %v418_v59 }
 0x216   : > { %vm395_vm3 = vcmp.ge.f32.partialorder %v394_v61, 1.0  ;;  %v420_v63 = vadd.f32 %v537_v48, %v419_v62 }
 0x217   : > { %v396_v0 = vsel %vm395_vm3, 0.0, %v394_v61  ;;  %v539_v1 = vsel %vm395_vm3, 1.0, %v648_v2 }
 0x218   : > { %v421_v3 = vadd.f32 %v420_v63, %v364_v53  ;;  %v426_v6 = vsel %vm287_vm2, %v367_v4, %v396_v0  ;;  %v431_v7 = vsel %vm287_vm2, %v538_v5, %v539_v1 }
 0x21a   : > { %vm422_vm7 = vcmp.ge.f32.partialorder %v421_v3, 1.0 }
 0x21b   : > { %v423_v8 = vsel %vm422_vm7, 0.0, %v421_v3  ;;  %v540_v9 = vsel %vm422_vm7, 1.0, %v648_v2 }
 0x21c   : > { %v428_v10 = vsel %vm427_vm5, %v426_v6, %v423_v8  ;;  %v432_v11 = vsel %vm427_vm5, %v431_v7, %v540_v9 }
 0x21d   : > { %430 = vst.msk [vmem:[#allocation2] sm:$0xff] %vm429_vm6, %v428_v10  ;;  %v433_v12 = vpack.c.bf16 %v432_v11, %v432_v11 }
 0x21f   : > { %435 = vst.msk [vmem:[%s718_s9] sm:$0xf] %vm434_vm8, %v433_v12 }
 0x220 PF: > { %s15_s22 = sadd.s32 1, %s645_s22   ;;  %s782_s18 = smov %s637_s20 }
 0x221   : > { %p12_p8 = scmp.ge.s32.totalorder %s15_s22, 6   ;;  %s783_s19 = smov %s641_s21 }
 0x222   : > { %s784_s20 = smov %s787_s23  ;;  %s785_s21 = smov %s791_s24 }
 0x223   :  { %14 = sbr.rel (!%p12_p8) target bundleno = 3 (0x3), region = 74 }

// kernel: spikformer_forward.16
= control target key start
LH: loop header
LB: loop body
LE: loop exit
PB: predicated region body
PF: predicated region fallthrough
CT: control target
= control target key end

     0   :  { %s695_s21 = smov 0   ;;  %s697_s22 = smov 0   ;;  %s783_s0 = inlined_call_operand.vmem [shape: bf16[2,16,32], index: 0, kind: input, shape index: {}]   ;;  %s784_s1 = inlined_call_operand.vmem [shape: bf16[32,32], index: 1, kind: input, shape index: {}]   ;;  %s785_s2 = inlined_call_operand.vmem [shape: f32[1,32], index: 2, kind: input, shape index: {}]   ;;  %s786_s3 = inlined_call_operand.vmem [shape: f32[1,32], index: 3, kind: input, shape index: {}]   ;;  %s787_s4 = inlined_call_operand.vmem [shape: f32[1,32], index: 4, kind: input, shape index: {}]   ;;  %s788_s5 = inlined_call_operand.vmem [shape: bf16[2,16,32], index: 5, kind: input, shape index: {}]   ;;  %s789_s6 = inlined_call_operand.vmem [shape: bf16[2,16,32], index: 6, kind: output, shape index: {}]  }
   0x1   :  { %s699_s23 = smov 0   ;;  %s701_s24 = smov 0  }
   0x2   :  { %s703_s25 = smov 0  }
   0x3 LB: > { %s25_s26 = sadd.s32 1, %s647_s23  ;;  %s28_s27 = sadd.s32 1, %s651_s24  ;;  %s655_s25 = sphi %s703_s25, %s16_s25   ;;  %s651_s24 = sphi %s701_s24, %s793_s24   ;;  %s647_s23 = sphi %s699_s23, %s792_s23   ;;  %s643_s22 = sphi %s697_s22, %s791_s22   ;;  %s639_s21 = sphi %s695_s21, %s790_s21  }
   0x4   : > { %p26_p0 = scmp.ge.s32.totalorder %s25_s26, 2  ;;  %p542_p1 = scmp.ge.s32.totalorder %s655_s25, 1 }
   0x5   : > { %p246_p2 = scmp.lt.s32.totalorder %s655_s25, 5 }
   0x6   : > { %s795_s26 = smov (%p26_p0, %s25_s26), 0  ;;  %s797_s27 = smov (!%p26_p0, %s28_s27), %s651_s24 }
   0x7   : > { %p247_p3 = pnand %p542_p1, %p246_p2  ;;  %p30_p4 = scmp.ge.s32.totalorder %s797_s27, 2 }
   0x8   : > { %p290_p5 = scmp.lt.s32.totalorder (!%p247_p3), %s639_s21, 1  ;;  %p292_p6 = scmp.lt.s32.totalorder (!%p247_p3), %s643_s22, 1 }
   0x9   : > { %s799_s27 = smov (%p30_p4, %s797_s27), 0  ;;  %250 = sbr.rel (%p247_p3) target bundleno = 426 (0x1aa), region = 44 }
   0xa   : > { %p549_p7 = scmp.ne.s32.totalorder (!%p247_p3), %s639_s21, 0 }
  0x10   : > { %s291_s28 = scalar_select %p290_p5, %s639_s21, 1 }
  0x11   : > { %s801_s22 = smov (!%p292_p6, %s643_s22), 1  ;;  %318 = sbr.rel (%p549_p7) target bundleno = 24 (0x18), region = 48 }
  0x12   : > { %s543_s29 = sshll.u32 %s291_s28, 1  ;;  %vm319_vm0 = vcmask (!%p549_p7), 261120   ;;  %v657_v0 = vmov (!%p549_p7), 0.0  }
  0x13   : > { %s295_s30 = sadd.s32 %s543_s29, %s801_s22  ;;  %320 = vst.msk [vmem:[#allocation2] sm:$0xff] (!%p549_p7), %vm319_vm0, %v657_v0 }
  0x14   : > { %s725_s7 = sshll.u32 %s295_s30, 2 }
  0x15   : > { %s297_s10 = scalar_lea.vmem %s783_s0, %s725_s7  ;;  %s305_s13 = scalar_lea.vmem %s788_s5, %s725_s7 }
  0x16   : > { %s313_s16 = scalar_lea.vmem %s789_s6, %s725_s7 }
  0x18 PF: > { %v613_v1 = vld [vmem:[%s784_s1] sm:$0xff]   ;;  %v658_v2 = vmov 0.0   ;;  %v614_v3 = vld [vmem:[%s784_s1 + $0x8] sm:$0xff]   ;;  %vm659_vm1 = vmmov 0   ;;  %vm345_vm2 = vcmask 261120   ;;  %vm432_vm4 = vcmask 257024  }
  0x19   : > { %562 = vmatprep.subr.bf16.mxu0 %v658_v2  ;;  %566 = vmatprep.mubr.msk.bf16.mxu0 %vm659_vm1, %v658_v2  ;;  %v321_v4 = vld [vmem:[%s297_s10] sm:$0xf] }
  0x1a   : > { %563 = vmatpush3.bf16.msra.mxu0 %v613_v1  ;;  %v550_v5 = vld [vmem:[%s785_s2] ss:$0 sm:$0xff] }
  0x1b   : > { %564 = vmatprep.subr.bf16.mxu0 %v658_v2  ;;  %v554_v23 = vld [vmem:[%s786_s3] ss:$0 sm:$0xff] }
  0x1c   : > { %v421_v24 = vld [vmem:[#allocation2] sm:$0xff] }
  0x1d   : > { %v555_v26 = vld [vmem:[%s787_s4] ss:$0 sm:$0xff]  ;;  %v422_v27 = vmul.f32 0.5, %v421_v24 }
  0x1e   : > { %565 = vmatpush3.bf16.msra.mxu0 %v614_v3  ;;  %v427_v31 = vld [vmem:[%s305_s13] sm:$0xf] }
  0x21   : > { %567 = vmatmul.mubr.msk.bf16.vlgmr.msra.gmra.mrb[0].mxu0 %vm345_vm2, %v321_v4 }
  0xf4   : > { %v383_v6 = vpop.f32.mrb[0].mxu0 }
  0xf5   : > { %v384_v7 = vadd.f32 %v550_v5, %v383_v6  ;;  %v568_v8 = vpop.f32.mrb[1].mxu0 }
  0xf6   : > { %v386_v9 = vpop.f32.mrb[2].mxu0 }
  0xf7   : > { %v569_v10 = vpop.f32.mrb[3].mxu0  ;;  %v391_v11 = vsel %vm345_vm2, %v384_v7, 0.0  ;;  %v396_v12 = vmul.f32 %v384_v7, %v384_v7 }
  0xf8   : > { %392 = vadd.xlane.f32.xlu0 %v391_v11 }
  0xf9   : > { %v397_v13 = vsel %vm345_vm2, %v396_v12, 0.0 }
  0xfc   : > { %398 = vadd.xlane.f32.xlu0 %v397_v13 }
 0x185   : > { %v393_v14 = vpop.xlane.xlu0 %392 }
 0x186   : > { %v395_v15 = vmul.f32 0.03125, %v393_v14 }
 0x188   : > { %v401_v17 = vmul.f32 %v395_v15, %v395_v15  ;;  %v403_v21 = vsub.f32 %v384_v7, %v395_v15 }
 0x189   : > { %v399_v16 = vpop.xlane.xlu0 %398 }
 0x18a   : > { %v400_v18 = vmul.f32 0.03125, %v399_v16 }
 0x18c   : > { %v402_v19 = vsub.f32 %v400_v18, %v401_v17 }
 0x18e   : > { %v404_v20 = vadd.f32 1e-05, %v402_v19 }
 0x190   : > { %615 = vrsqrt.f32 %v404_v20 }
 0x19a   : > { %v616_v22 = vpop.eup %615 }
 0x19b   : > { %v406_v25 = vmul.f32 %v616_v22, %v403_v21 }
 0x19d   : > { %v413_v28 = vmul.f32 %v554_v23, %v406_v25 }
 0x19f   : > { %v420_v29 = vadd.f32 %v555_v26, %v413_v28 }
 0x1a1   : > { %v423_v30 = vadd.f32 %v422_v27, %v420_v29 }
 0x1a3   : > { %vm424_vm3 = vcmp.ge.f32.partialorder %v423_v30, 1.0 }
 0x1a4   : > { %v425_v32 = vsel %vm424_vm3, 0.0, %v423_v30  ;;  %v556_v33 = vsel %vm424_vm3, 1.0, %v658_v2 }
 0x1a5   : > { %426 = vst.msk [vmem:[#allocation2] sm:$0xff] %vm345_vm2, %v425_v32  ;;  %v430_v34 = vpack.c.bf16 %v556_v33, %v556_v33 }
 0x1a7   : > { %v431_v35 = vadd.bf16 %v430_v34, %v427_v31 }
 0x1a9   : > { %433 = vst.msk [vmem:[%s313_s16] sm:$0xf] %vm432_vm4, %v431_v35 }
 0x1aa PF: > { %s16_s25 = sadd.s32 1, %s655_s25   ;;  %s790_s21 = smov %s647_s23 }
 0x1ab   : > { %p13_p8 = scmp.ge.s32.totalorder %s16_s25, 6   ;;  %s791_s22 = smov %s651_s24 }
 0x1ac   : > { %s792_s23 = smov %s795_s26  ;;  %s793_s24 = smov %s799_s27 }
 0x1ad   :  { %15 = sbr.rel (!%p13_p8) target bundleno = 3 (0x3), region = 81 }

// kernel: spikformer_forward.15
= control target key start
LH: loop header
LB: loop body
LE: loop exit
PB: predicated region body
PF: predicated region fallthrough
CT: control target
= control target key end

     0   :  { %s882_s6 = smov 0   ;;  %s884_s7 = smov 0   ;;  %s978_s0 = inlined_call_operand.vmem [shape: bf16[2,2,8,96], index: 0, kind: input, shape index: {}]   ;;  %s979_s1 = inlined_call_operand.vmem [shape: bf16[2,2,8,32], index: 1, kind: output, shape index: {}]  }
   0x1   :  { %s886_s8 = smov 0   ;;  %s888_s9 = smov 0  }
   0x2   :  { %s890_s10 = smov 0  }
   0x3 LB: > { %s20_s11 = sadd.s32 1, %s845_s8  ;;  %s23_s12 = sadd.s32 1, %s849_s9  ;;  %s853_s10 = sphi %s890_s10, %s11_s10   ;;  %s849_s9 = sphi %s888_s9, %s983_s9   ;;  %s845_s8 = sphi %s886_s8, %s982_s8   ;;  %s841_s7 = sphi %s884_s7, %s981_s7   ;;  %s837_s6 = sphi %s882_s6, %s980_s6  }
   0x4   : > { %p21_p0 = scmp.ge.s32.totalorder %s20_s11, 2  ;;  %p675_p1 = scmp.ge.s32.totalorder %s853_s10, 1 }
   0x5   : > { %p106_p2 = scmp.lt.s32.totalorder %s853_s10, 5 }
   0x6   : > { %s985_s11 = smov (%p21_p0, %s20_s11), 0  ;;  %s987_s12 = smov (!%p21_p0, %s23_s12), %s849_s9 }
   0x7   : > { %p107_p3 = pnand %p675_p1, %p106_p2  ;;  %p25_p4 = scmp.ge.s32.totalorder %s987_s12, 2 }
   0x8   : > { %p132_p5 = scmp.lt.s32.totalorder (!%p107_p3), %s837_s6, 1  ;;  %p134_p6 = scmp.lt.s32.totalorder (!%p107_p3), %s841_s7, 1 }
   0x9   : > { %s989_s12 = smov (%p25_p4, %s987_s12), 0  ;;  %110 = sbr.rel (%p107_p3) target bundleno = 939 (0x3ab), region = 24 }
   0xa   : > { %p680_p7 = scmp.ne.s32.totalorder (!%p107_p3), %s837_s6, 0 }
  0x10   : > { %s133_s13 = scalar_select %p132_p5, %s837_s6, 1 }
  0x11   : > { %s991_s7 = smov (!%p134_p6, %s841_s7), 1  ;;  %152 = sbr.rel (%p680_p7) target bundleno = 24 (0x18), region = 28 }
  0x12   : > { %s676_s14 = sshll.u32 %s133_s13, 1  ;;  %vm153_vm0 = vcmask (!%p680_p7), 261120   ;;  %v855_v0 = vmov (!%p680_p7), 0.0  }
  0x13   : > { %s137_s15 = sadd.s32 %s676_s14, %s991_s7  ;;  %154 = vst.msk [vmem:[#allocation2] sm:$0xff] (!%p680_p7), %vm153_vm0, %v855_v0 }
  0x14   : > { %s677_s16 = sshll.u32 %s137_s15, 2 }
  0x15   : > { %s139_s19 = scalar_lea.vmem %s978_s0, %s677_s16  ;;  %s918_s22 = scalar_lea.vmem %s979_s1, %s677_s16 }
  0x18 PF: > { %v155_v1 = vld [vmem:[%s139_s19] sm:$0xf]  ;;  %v856_v3 = vmov 0.0   ;;  %vm857_vm1 = vmmov 0   ;;  %s858_s23 = smov 96   ;;  %s859_s24 = smov 88  }
  0x19   : > { %v681_v2 = vcombine.low %v155_v1, %v155_v1  ;;  %709 = vmatprep.subr.bf16.mxu0 %v856_v3  ;;  %711 = vmatprep.mubr.msk.bf16.mxu0 %vm857_vm1, %v856_v3  ;;  %s860_s25 = smov 64   ;;  %s861_s26 = smov 120   ;;  %vm161_vm2 = vcmask 64512   ;;  %vm214_vm3 = vcmask 1043456   ;;  %vm568_vm4 = vcmask 130048  }
  0x1a   : > { %715 = vmatprep.subr.bf16.mxu1 %v856_v3  ;;  %717 = vmatprep.mubr.msk.bf16.mxu1 %vm857_vm1, %v856_v3  ;;  %s862_s27 = smov 80   ;;  %s863_s28 = smov 112   ;;  %v572_v61 = vld [vmem:[#allocation2] sm:$0xff]  ;;  %vm570_vm5 = vcmask 195584   ;;  %vm578_vm6 = vcmask 261120   ;;  %vm583_vm8 = vcmask 257024  }
  0x1b   : > { %159 = vrot.lane.b32.xlu0 %v681_v2, %s858_s23  ;;  %260 = vrot.lane.b32.xlu1 %v681_v2, %s859_s24  ;;  %s864_s29 = smov 72   ;;  %s865_s30 = smov 104   ;;  %v573_v0 = vmul.f32 0.5, %v572_v61 }
  0x1c   : > { %s866_s2 = smov 56   ;;  %s867_s3 = smov 48  }
  0x1d   : > { %s868_s4 = smov 40   ;;  %s869_s5 = smov 8  }
  0x1e   : > { %s870_s6 = smov 16   ;;  %s871_s7 = smov 24  }
  0x1f   : > { %209 = vrot.lane.b32.xlu0 %v681_v2, %s860_s25  ;;  %258 = vrot.lane.b32.xlu1 %v681_v2, %s861_s26 }
  0x23   : > { %359 = vrot.lane.b32.xlu0 %v681_v2, %s862_s27  ;;  %357 = vrot.lane.b32.xlu1 %v681_v2, %s863_s28 }
  0x27   : > { %458 = vrot.lane.b32.xlu0 %v681_v2, %s864_s29  ;;  %456 = vrot.lane.b32.xlu1 %v681_v2, %s865_s30 }
  0x2b   : > { %309 = vrot.lane.b32.xlu0 %v681_v2, %s866_s2  ;;  %408 = vrot.lane.b32.xlu1 %v681_v2, %s867_s3 }
  0x2f   : > { %507 = vrot.lane.b32.xlu0 %v681_v2, %s868_s4 }
  0x8d   : > { %v160_v4 = vpop.permute.xlu0 %159  ;;  %v261_v8 = vpop.permute.xlu1 %260 }
  0x8e   : > { %v166_v5 = vsel %vm161_vm2, %v160_v4, 0  ;;  %v266_v11 = vsel %vm161_vm2, %v261_v8, 0 }
  0x8f   : > { %710 = vmatpush3.bf16.xpose.msra.mxu0 %v166_v5 }
  0x90   : > { %727 = vmatprep.subr.bf16.mxu0 %v856_v3 }
  0x91   : > { %v210_v6 = vpop.permute.xlu0 %209  ;;  %v259_v16 = vpop.permute.xlu1 %258 }
  0x92   : > { %v216_v7 = vsel %vm214_vm3, %v210_v6, 0 }
  0x93   : > { %716 = vmatpush3.bf16.msra.mxu1 %v216_v7 }
  0x94   : > { %721 = vmatprep.subr.bf16.mxu1 %v856_v3 }
  0x95   : > { %v360_v15 = vpop.permute.xlu0 %359  ;;  %v358_v19 = vpop.permute.xlu1 %357 }
  0x96   : > { %712 = vmatmul.mubr.msk.bf16.vlgmr.msra.gmra.mrb[0].mxu0 %vm161_vm2, %v155_v1  ;;  %v365_v17 = vsel %vm161_vm2, %v360_v15, 0 }
  0x97   : > { %729 = vmatprep.mubr.msk.bf16.mxu0 %vm857_vm1, %v856_v3 }
  0x99   : > { %v459_v18 = vpop.permute.xlu0 %458  ;;  %v457_v21 = vpop.permute.xlu1 %456 }
  0x9a   : > { %v464_v20 = vsel %vm161_vm2, %v459_v18, 0 }
  0x9d   : > { %v310_v22 = vpop.permute.xlu0 %309  ;;  %v409_v28 = vpop.permute.xlu1 %408 }
  0x9e   : > { %v315_v23 = vsel %vm214_vm3, %v310_v22, 0  ;;  %v414_v31 = vsel %vm214_vm3, %v409_v28, 0 }
  0x9f   : > { %728 = vmatpush3.bf16.msra.mxu0 %v315_v23 }
  0xa0   : > { %739 = vmatprep.subr.bf16.mxu0 %v856_v3 }
  0xa1   : > { %v508_v35 = vpop.permute.xlu0 %507 }
  0xa2   : > { %v513_v39 = vsel %vm214_vm3, %v508_v35, 0 }
 0x169   : > { %v202_v9 = vpop.f32.mrb[0].mxu0 }
 0x16a   : > { %v208_v10 = vpack.c.bf16 %v202_v9, %v202_v9  ;;  %v713_v12 = vpop.f32.mrb[1].mxu0 }
 0x16b   : > { %v205_v13 = vpop.f32.mrb[2].mxu0 }
 0x16c   : > { %v714_v14 = vpop.f32.mrb[3].mxu0  ;;  %718 = vmatmul.mubr.msk.bf16.vlgmr.msra.gmra.mrb[0].mxu1 %vm161_vm2, %v208_v10 }
 0x16d   : > { %722 = vmatpush3.bf16.xpose.msra.mxu1 %v266_v11  ;;  %723 = vmatprep.mubr.msk.bf16.mxu1 %vm857_vm1, %v856_v3 }
 0x16e   : > { %733 = vmatprep.subr.bf16.mxu1 %v856_v3 }
 0x174   : > { %724 = vmatmul.mubr.msk.bf16.vlgmr.msra.gmra.mrb[4].mxu1 %vm161_vm2, %v259_v16 }
 0x175   : > { %734 = vmatpush3.bf16.xpose.msra.mxu1 %v365_v17  ;;  %735 = vmatprep.mubr.msk.bf16.mxu1 %vm857_vm1, %v856_v3 }
 0x176   : > { %745 = vmatprep.subr.bf16.mxu1 %v856_v3 }
 0x17c   : > { %736 = vmatmul.mubr.msk.bf16.vlgmr.msra.gmra.mrb[8].mxu1 %vm161_vm2, %v358_v19 }
 0x17d   : > { %746 = vmatpush3.bf16.xpose.msra.mxu1 %v464_v20  ;;  %747 = vmatprep.mubr.msk.bf16.mxu1 %vm857_vm1, %v856_v3 }
 0x184   : > { %748 = vmatmul.mubr.msk.bf16.vlgmr.msra.gmra.mrb[12].mxu1 %vm161_vm2, %v457_v21 }
 0x23f   : > { %v252_v24 = vpop.f32.mrb[0].mxu1 }
 0x240   : > { %v719_v25 = vpop.f32.mrb[1].mxu1 }
 0x241   : > { %v255_v26 = vpop.f32.mrb[2].mxu1 }
 0x242   : > { %v720_v27 = vpop.f32.mrb[3].mxu1 }
 0x247   : > { %v302_v29 = vpop.f32.mrb[4].mxu1 }
 0x248   : > { %v308_v30 = vpack.c.bf16 %v302_v29, %v302_v29  ;;  %v725_v32 = vpop.f32.mrb[5].mxu1 }
 0x249   : > { %v305_v33 = vpop.f32.mrb[6].mxu1 }
 0x24a   : > { %v726_v34 = vpop.f32.mrb[7].mxu1  ;;  %730 = vmatmul.mubr.msk.bf16.vlgmr.msra.gmra.mrb[4].mxu0 %vm161_vm2, %v308_v30 }
 0x24b   : > { %740 = vmatpush3.bf16.msra.mxu0 %v414_v31  ;;  %741 = vmatprep.mubr.msk.bf16.mxu0 %vm857_vm1, %v856_v3 }
 0x24c   : > { %751 = vmatprep.subr.bf16.mxu0 %v856_v3 }
 0x24f   : > { %v401_v36 = vpop.f32.mrb[8].mxu1 }
 0x250   : > { %v407_v37 = vpack.c.bf16 %v401_v36, %v401_v36  ;;  %v737_v38 = vpop.f32.mrb[9].mxu1 }
 0x251   : > { %v404_v40 = vpop.f32.mrb[10].mxu1 }
 0x252   : > { %v738_v41 = vpop.f32.mrb[11].mxu1  ;;  %742 = vmatmul.mubr.msk.bf16.vlgmr.msra.gmra.mrb[8].mxu0 %vm161_vm2, %v407_v37 }
 0x253   : > { %752 = vmatpush3.bf16.msra.mxu0 %v513_v39  ;;  %753 = vmatprep.mubr.msk.bf16.mxu0 %vm857_vm1, %v856_v3 }
 0x257   : > { %v500_v42 = vpop.f32.mrb[12].mxu1 }
 0x258   : > { %v506_v43 = vpack.c.bf16 %v500_v42, %v500_v42  ;;  %v749_v44 = vpop.f32.mrb[13].mxu1 }
 0x259   : > { %v503_v45 = vpop.f32.mrb[14].mxu1 }
 0x25a   : > { %v750_v46 = vpop.f32.mrb[15].mxu1  ;;  %754 = vmatmul.mubr.msk.bf16.vlgmr.msra.gmra.mrb[12].mxu0 %vm161_vm2, %v506_v43 }
 0x31d   : > { %v351_v47 = vpop.f32.mrb[4].mxu0 }
 0x31e   : > { %556 = vrot.lane.b32.xlu1 %v351_v47, %s869_s5  ;;  %v731_v48 = vpop.f32.mrb[5].mxu0 }
 0x31f   : > { %v354_v49 = vpop.f32.mrb[6].mxu0 }
 0x320   : > { %v732_v50 = vpop.f32.mrb[7].mxu0 }
 0x325   : > { %v450_v51 = vpop.f32.mrb[8].mxu0 }
 0x326   : > { %560 = vrot.lane.b32.xlu0 %v450_v51, %s870_s6  ;;  %v743_v52 = vpop.f32.mrb[9].mxu0 }
 0x327   : > { %v453_v53 = vpop.f32.mrb[10].mxu0 }
 0x328   : > { %v744_v54 = vpop.f32.mrb[11].mxu0 }
 0x32d   : > { %v549_v55 = vpop.f32.mrb[12].mxu0 }
 0x32e   : > { %564 = vrot.lane.b32.xlu1 %v549_v55, %s871_s7  ;;  %v755_v56 = vpop.f32.mrb[13].mxu0 }
 0x32f   : > { %v552_v57 = vpop.f32.mrb[14].mxu0 }
 0x330   : > { %v756_v58 = vpop.f32.mrb[15].mxu0 }
 0x390   : > { %v557_v59 = vpop.permute.xlu1 %556 }
 0x391   : > { %v567_v62 = vsel %vm161_vm2, %v252_v24, %v557_v59 }
 0x398   : > { %v561_v60 = vpop.permute.xlu0 %560 }
 0x399   : > { %v569_v63 = vsel %vm568_vm4, %v567_v62, %v561_v60 }
 0x3a0   : > { %v565_v1 = vpop.permute.xlu1 %564 }
 0x3a1   : > { %v571_v2 = vsel %vm570_vm5, %v569_v63, %v565_v1 }
 0x3a2   : > { %v574_v4 = vmul.f32 0.0625, %v571_v2 }
 0x3a4   : > { %v575_v5 = vadd.f32 %v574_v4, %v573_v0 }
 0x3a6   : > { %vm576_vm7 = vcmp.ge.f32.partialorder %v575_v5, 0.5 }
 0x3a7   : > { %v577_v6 = vsel %vm576_vm7, 0.0, %v575_v5  ;;  %v690_v7 = vsel %vm576_vm7, 1.0, %v856_v3 }
 0x3a8   : > { %579 = vst.msk [vmem:[#allocation2] sm:$0xff] %vm578_vm6, %v577_v6  ;;  %v582_v8 = vpack.c.bf16 %v690_v7, %v690_v7 }
 0x3aa   : > { %584 = vst.msk [vmem:[%s918_s22] sm:$0xf] %vm583_vm8, %v582_v8 }
 0x3ab PF: > { %s11_s10 = sadd.s32 1, %s853_s10   ;;  %s980_s6 = smov %s845_s8 }
 0x3ac   : > { %p8_p8 = scmp.ge.s32.totalorder %s11_s10, 6   ;;  %s981_s7 = smov %s849_s9 }
 0x3ad   : > { %s982_s8 = smov %s985_s11  ;;  %s983_s9 = smov %s989_s12 }
 0x3ae   :  { %10 = sbr.rel (!%p8_p8) target bundleno = 3 (0x3), region = 58 }

// kernel: spikformer_forward.19
= control target key start
LH: loop header
LB: loop body
LE: loop exit
PB: predicated region body
PF: predicated region fallthrough
CT: control target
= control target key end

     0   :  { %10 = vsyncpa [#allocation3], 0  ;;  %s715_s0 = inlined_call_operand.vmem [shape: f32[16,32], index: 0, kind: input, shape index: {}]   ;;  %s716_s1 = inlined_call_operand.vmem [shape: f32[32,32], index: 1, kind: input, shape index: {}]   ;;  %s717_s2 = inlined_call_operand.vmem [shape: f32[1,32], index: 2, kind: input, shape index: {}]   ;;  %s718_s3 = inlined_call_operand.vmem [shape: f32[1,32], index: 3, kind: input, shape index: {}]   ;;  %s719_s4 = inlined_call_operand.vmem [shape: f32[1,32], index: 4, kind: input, shape index: {}]   ;;  %s720_s5 = inlined_call_operand.hbm [shape: f32[16,32], index: 5, kind: output, shape index: {}]  }
   0x1   :  { %12 = vsyncpa [#allocation3 + $0x1], 0  ;;  %s590_s18 = smov 0   ;;  %s592_s19 = smov 0  }
   0x2   :  { %s594_s20 = smov 0   ;;  %s596_s21 = smov 0  }
   0x3 LB: > { %s611_s22 = sadd.s32 4294967295, %s554_s21   ;;  %s412_s23 = sadd.s32 4294967294, %s554_s21   ;;  %s554_s21 = sphi %s596_s21, %s726_s21   ;;  %s550_s20 = sphi %s594_s20, %s725_s20   ;;  %s546_s19 = sphi %s592_s19, %s724_s19   ;;  %s542_s18 = sphi %s590_s18, %s723_s18  }
   0x4   : > { %s615_s24 = sadd.s32 1, %s554_s21   ;;  %s135_s25 = sadd.s32 1, %s550_s20 }
   0x5   : > { %s132_s26 = ssub.s32 %s554_s21, %s615_s24  ;;  %p145_p0 = scmp.ne.s32.totalorder %s550_s20, %s546_s19 }
   0x6   : > { %p133_p1 = scmp.eq.s32.totalorder %s132_s26, 0  ;;  %p146_p2 = scmp.eq.s32.totalorder %s611_s22, 1 }
   0x7   : > { %p151_p3 = scmp.ne.s32.totalorder %s546_s19, %s542_s18  ;;  %p152_p4 = scmp.eq.s32.totalorder %s412_s23, 1 }
   0x8   : > { %s626_s27 = scalar_select %p133_p1, %s550_s20, %s135_s25  }
   0x9   : > { %p628_p5 = por %p146_p2, %p145_p0  ;;  %p632_p6 = por %p152_p4, %p151_p3 }
   0xa   : > { %p415_p7 = scmp.ge.s32.totalorder %s554_s21, 1  ;;  %p189_p8 = scmp.lt.s32.totalorder %s554_s21, 3 }
   0xc   : > { %p190_p9 = pnand %p415_p7, %p189_p8 }
   0xd   : > { %v221_v0 = vld [vmem:[%s716_s1] sm:$0xff] (!%p190_p9)  ;;  %v222_v1 = vld [vmem:[%s716_s1 + $0x8] sm:$0xff] (!%p190_p9)  ;;  %v223_v2 = vld [vmem:[%s716_s1 + $0x10] sm:$0xff] (!%p190_p9)  ;;  %v556_v3 = vmov (!%p190_p9), 0.0|0.0   ;;  %vm557_vm0 = vmmov (!%p190_p9), 0   ;;  %v558_v6 = vmov (!%p190_p9), 0.0  }
   0xe   : > { %193 = sbr.rel (%p190_p9) target bundleno = 424 (0x1a8), region = 40  ;;  %442 = vmatprep.subr.bf16.mxu0 (!%p190_p9), %v556_v3  ;;  %v443_v4 = vpack.c.bf16 (!%p190_p9), %v222_v1, %v221_v0  ;;  %v224_v5 = vld [vmem:[%s716_s1 + $0x18] sm:$0xff] (!%p190_p9)  ;;  %439 = vmatprep.mubr.msk.f32.mxu0 (!%p190_p9), %vm557_vm0, %v558_v6  ;;  %p216_p10 = scmp.lt.s32.totalorder (!%p190_p9), %s611_s22, 1  ;;  %vm232_vm1 = vcmask (!%p190_p9), 261120   ;;  %v418_v9 = vld [vmem:[%s717_s2] ss:$0 sm:$0xff] (!%p190_p9) }
   0xf   : > { %v446_v7 = vpack.c.bf16 (!%p190_p9), %v224_v5, %v223_v2  ;;  %s213_s26 = sand.u32 (!%p190_p9), 1, %s546_s19   ;;  %v420_v25 = vld [vmem:[%s718_s3] ss:$0 sm:$0xff] (!%p190_p9)  ;;  %s423_s10 = sshll.u32 (!%p190_p9), %s611_s22, 7 }
  0x10   : > { %444 = vmatpush3.bf16.msra.mxu0 (!%p190_p9), %v443_v4  ;;  %s416_s30 = sshll.u32 (!%p190_p9), %s213_s26, 3  ;;  %v421_v27 = vld [vmem:[%s719_s4] ss:$0 sm:$0xff] (!%p190_p9)  ;;  %s672_s15 = scalar_lea.hbm (!%p190_p9), %s720_s5, %s423_s10 }
  0x11   : > { %445 = vmatprep.subr.bf16.mxu0 (!%p190_p9), %v556_v3  ;;  %s215_s11 = scalar_lea.vmem (!%p190_p9), [#allocation2], %s416_s30  ;;  %s340_s16 = scalar_lea.sflag (!%p190_p9), [#allocation3], %s213_s26 }
  0x12   : > { %s353_s12 = sshll.u32 (!%p190_p9), %s215_s11, 4  ;;  %s674_s12 = int_to_ptr.vmem [resolvable:$true] %s353_s12 }
  0x14   : > { %447 = vmatpush3.bf16.msra.mxu0 (!%p190_p9), %v446_v7 }
  0x15   : > { %s217_s13 = scalar_select %p216_p10, %s611_s22, 1 }
  0x16   : > { %s559_s22 = smov [#allocation2]  }
  0x17   : > { %s417_s14 = sshll.u32 %s217_s13, 3  ;;  %s496_s23 = sshll.u32 %s559_s22, 4  ;;  %s497_s23 = int_to_ptr.vmem [resolvable:$false] %s496_s23 }
  0x18   : > { %s219_s17 = scalar_lea.vmem %s715_s0, %s417_s14  ;;  %s498_s25 = scalar_lea.vmem %s497_s23, 256 }
  0x19   : > { %v220_v8 = vld [vmem:[%s219_s17] sm:$0xff]  ;;  %s492_s17 = scalar_lea.vmem %s674_s12, 128  ;;  %p499_p0 = scmp.lt.s32.totalorder %s674_s12, %s497_s23 }
  0x1a   : > { %440 = vmatmul.mubr.msk.f32.vlgmr.msra.gmra.mrb[0].mxu0 %vm232_vm1, %v220_v8  ;;  %p493_p11 = scmp.ne.s32.totalorder %s674_s12, %s492_s17  ;;  %p500_p1 = scmp.lt.s32.totalorder %s498_s25, %s492_s17 }
  0x1c   : > { %p494_p12 = pnand %p493_p11, %p628_p5  ;;  %p501_p2 = por %p500_p1, %p499_p0 }
  0x1e   : > { %p495_p13 = pneg %p494_p12 }
  0x20   : > { %p502_p3 = pnand %p501_p2, %p495_p13 }
  0xed   : > { %v302_v10 = vpop.f32.mrb[0].mxu0 }
  0xee   : > { %v303_v11 = vadd.f32 %v418_v9, %v302_v10  ;;  %v441_v12 = vpop.f32.mrb[1].mxu0 }
  0xf0   : > { %v308_v13 = vsel %vm232_vm1, %v303_v11, 0.0  ;;  %v313_v14 = vmul.f32 %v303_v11, %v303_v11 }
  0xf1   : > { %309 = vadd.xlane.f32.xlu0 %v308_v13 }
  0xf2   : > { %v314_v15 = vsel %vm232_vm1, %v313_v14, 0.0 }
  0xf5   : > { %315 = vadd.xlane.f32.xlu0 %v314_v15 }
 0x17e   : > { %v310_v16 = vpop.xlane.xlu0 %309 }
 0x17f   : > { %v312_v17 = vmul.f32 0.03125, %v310_v16 }
 0x181   : > { %v318_v19 = vmul.f32 %v312_v17, %v312_v17  ;;  %v320_v23 = vsub.f32 %v303_v11, %v312_v17 }
 0x182   : > { %v316_v18 = vpop.xlane.xlu0 %315 }
 0x183   : > { %v317_v20 = vmul.f32 0.03125, %v316_v18 }
 0x185   : > { %v319_v21 = vsub.f32 %v317_v20, %v318_v19 }
 0x187   : > { %v321_v22 = vadd.f32 1e-05, %v319_v21 }
 0x189   : > { %490 = vrsqrt.f32 %v321_v22 }
 0x193   : > { %v491_v24 = vpop.eup %490 }
 0x194   : > { %v323_v26 = vmul.f32 %v491_v24, %v320_v23 }
 0x196   : > { %v330_v28 = vmul.f32 %v420_v25, %v323_v26 }
 0x198   : > { %v337_v29 = vadd.f32 %v421_v27, %v330_v28 }
 0x19a   : > { %338 = vst.msk [vmem:[%s215_s11] sm:$0xff] %vm232_vm1, %v337_v29 }
 0x19b   : > { %505 = shalt.err (!%p502_p3)
}
 0x19c   : > { %s506_s26 = scalar_lea.hbm %s672_s15, 128  ;;  %s510_s7 = scalar_lea.hbm %s720_s5, 256 }
 0x19d   : > { %p507_p4 = scmp.ne.s32.totalorder %s672_s15, %s506_s26  ;;  %p511_p9 = scmp.lt.u32.totalorder %s672_s15, %s720_s5 }
 0x19e   : > { %p512_p10 = scmp.lt.u32.totalorder %s510_s7, %s506_s26  ;;  %p514_p12 = scmp.lt.u32.totalorder %s506_s26, %s672_s15 }
 0x19f   : > { %p508_p7 = pnand %p507_p4, %p628_p5 }
 0x1a0   : > { %p513_p11 = por %p512_p10, %p511_p9 }
 0x1a1   : > { %p509_p8 = pneg %p508_p7 }
 0x1a2   : > { %p515_p13 = por %p514_p12, %p513_p11 }
 0x1a4   : > { %p516_p0 = pnand %p515_p13, %p509_p8 }
 0x1a6   : > { %519 = shalt.err (!%p516_p0)
}
 0x1a7   : > { %448 = dma.vmem_to_hbm [thread:$0]  (%p628_p5), %s674_s12, 128, %s672_s15, %s340_s16  }
 0x1a8 PF: > { %p454_p1 = scmp.ge.s32.totalorder %s554_s21, 2  ;;  %s365_s10 = sand.u32 1, %s542_s18  }
 0x1a9   : > { %s366_s11 = scalar_lea.sflag [#allocation3], %s365_s10 }
 0x1aa   : > { %p451_p2 = pnand %p454_p1, %p632_p6 }
 0x1ac   : > { %537 = dma.done.wait (!%p451_p2), %s366_s11, 128  }
 0x1ad   : > { %539 = vsyncadd (!%p451_p2), %s366_s11, 4294967168  ;;  %p15_p3 = scmp.ge.s32.totalorder %s615_s24, 4   ;;  %s723_s18 = smov %s546_s19 }
 0x1ae   : > { %s724_s19 = smov %s550_s20  ;;  %s725_s20 = smov %s626_s27 }
 0x1af   : > { %s726_s21 = smov %s615_s24  ;;  %17 = sbr.rel (!%p15_p3) target bundleno = 3 (0x3), region = 75 }
 0x1b6   :  { %371 = vsyncpa [#allocation3], 1 }
 0x1b7   :  { %373 = vsyncpa [#allocation3 + $0x1], 1 }

// kernel: spikformer_forward.18
= control target key start
LH: loop header
LB: loop body
LE: loop exit
PB: predicated region body
PF: predicated region fallthrough
CT: control target
= control target key end

     0   :  { %s850_s24 = smov 0   ;;  %s852_s25 = smov 0   ;;  %s969_s0 = inlined_call_operand.vmem [shape: bf16[2,16,128], index: 0, kind: input, shape index: {}]   ;;  %s970_s1 = inlined_call_operand.vmem [shape: bf16[128,32], index: 1, kind: input, shape index: {}]   ;;  %s971_s2 = inlined_call_operand.vmem [shape: f32[1,32], index: 2, kind: input, shape index: {}]   ;;  %s972_s3 = inlined_call_operand.vmem [shape: f32[1,32], index: 3, kind: input, shape index: {}]   ;;  %s973_s4 = inlined_call_operand.vmem [shape: f32[1,32], index: 4, kind: input, shape index: {}]   ;;  %s974_s5 = inlined_call_operand.vmem [shape: bf16[2,16,32], index: 5, kind: input, shape index: {}]   ;;  %s975_s6 = inlined_call_operand.vmem [shape: bf16[2,16,32], index: 6, kind: output, shape index: {0}]   ;;  %s976_s7 = inlined_call_operand.vmem [shape: f32[16,32], index: 7, kind: output, shape index: {1}]  }
   0x1   :  { %s854_s26 = smov 0   ;;  %s856_s27 = smov 0  }
   0x2   :  { %s858_s28 = smov 0  }
   0x3 LB: > { %s27_s29 = sadd.s32 1, %s797_s26  ;;  %s30_s30 = sadd.s32 1, %s801_s27  ;;  %s805_s28 = sphi %s858_s28, %s18_s28   ;;  %s801_s27 = sphi %s856_s27, %s980_s27   ;;  %s797_s26 = sphi %s854_s26, %s979_s26   ;;  %s793_s25 = sphi %s852_s25, %s978_s25   ;;  %s789_s24 = sphi %s850_s24, %s977_s24  }
   0x4   : > { %p28_p0 = scmp.ge.s32.totalorder %s27_s29, 2  ;;  %p662_p1 = scmp.ge.s32.totalorder %s805_s28, 1 }
   0x5   : > { %p274_p2 = scmp.lt.s32.totalorder %s805_s28, 5 }
   0x6   : > { %s982_s29 = smov (%p28_p0, %s27_s29), 0  ;;  %s984_s30 = smov (!%p28_p0, %s30_s30), %s801_s27 }
   0x7   : > { %p275_p3 = pnand %p662_p1, %p274_p2  ;;  %p32_p4 = scmp.ge.s32.totalorder %s984_s30, 2 }
   0x8   : > { %p324_p5 = scmp.lt.s32.totalorder (!%p275_p3), %s789_s24, 1  ;;  %p326_p6 = scmp.lt.s32.totalorder (!%p275_p3), %s793_s25, 1 }
   0x9   : > { %s986_s30 = smov (%p32_p4, %s984_s30), 0  ;;  %278 = sbr.rel (%p275_p3) target bundleno = 452 (0x1c4), region = 44 }
   0xa   : > { %p670_p7 = scmp.ne.s32.totalorder (!%p275_p3), %s789_s24, 0 }
  0x10   : > { %s325_s8 = scalar_select %p324_p5, %s789_s24, 1 }
  0x11   : > { %s988_s25 = smov (!%p326_p6, %s793_s25), 1  ;;  %356 = sbr.rel (%p670_p7) target bundleno = 24 (0x18), region = 48 }
  0x12   : > { %s663_s9 = sshll.u32 %s325_s8, 1  ;;  %s669_s11 = sshll.u32 %s988_s25, 3  ;;  %vm357_vm0 = vcmask (!%p670_p7), 261120   ;;  %v807_v0 = vmov (!%p670_p7), 0.0  }
  0x13   : > { %s329_s10 = sadd.s32 %s663_s9, %s988_s25  ;;  %s885_s15 = scalar_lea.vmem %s976_s7, %s669_s11  ;;  %358 = vst.msk [vmem:[#allocation2] sm:$0xff] (!%p670_p7), %vm357_vm0, %v807_v0 }
  0x14   : > { %s880_s12 = sshll.u32 %s329_s10, 2  ;;  %359 = vst.msk [vmem:[%s885_s15] sm:$0xff] (!%p670_p7), %vm357_vm0, %v807_v0 }
  0x15   : > { %s331_s18 = scalar_lea.vmem %s969_s0, %s880_s12  ;;  %s339_s21 = scalar_lea.vmem %s974_s5, %s880_s12 }
  0x16   : > { %s347_s25 = scalar_lea.vmem %s975_s6, %s880_s12 }
  0x18 PF: > { %v757_v1 = vld [vmem:[%s970_s1] sm:$0xff]   ;;  %v808_v2 = vmov 0.0   ;;  %v758_v3 = vld [vmem:[%s970_s1 + $0x8] sm:$0xff]   ;;  %vm809_vm1 = vmmov 0   ;;  %v759_v4 = vld [vmem:[%s970_s1 + $0x10] sm:$0xff]   ;;  %vm474_vm2 = vcmask 261120  }
  0x19   : > { %694 = vmatprep.subr.bf16.mxu0 %v808_v2  ;;  %710 = vmatprep.mubr.msk.bf16.mxu0 %vm809_vm1, %v808_v2  ;;  %v760_v5 = vld [vmem:[%s970_s1 + $0x18] sm:$0xff]   ;;  %v761_v6 = vld [vmem:[%s970_s1 + $0x20] sm:$0xff]   ;;  %v762_v7 = vld [vmem:[%s970_s1 + $0x28] sm:$0xff]   ;;  %vm517_vm4 = vcmask 257024  }
  0x1a   : > { %695 = vmatpush3.bf16.msra.mxu0 %v757_v1  ;;  %v763_v8 = vld [vmem:[%s970_s1 + $0x30] sm:$0xff]   ;;  %v764_v9 = vld [vmem:[%s970_s1 + $0x38] sm:$0xff]   ;;  %v360_v10 = vld [vmem:[%s331_s18] sm:$0xf] }
  0x1b   : > { %696 = vmatprep.subr.bf16.mxu0 %v808_v2  ;;  %v671_v11 = vld [vmem:[%s971_s2] ss:$0 sm:$0xff] }
  0x1c   : > { %v680_v29 = vld [vmem:[%s972_s3] ss:$0 sm:$0xff] }
  0x1d   : > { %v505_v30 = vld [vmem:[#allocation2] sm:$0xff] }
  0x1e   : > { %697 = vmatpush3.bf16.msra.mxu0 %v758_v3  ;;  %v681_v32 = vld [vmem:[%s973_s4] ss:$0 sm:$0xff]  ;;  %v506_v33 = vmul.f32 0.5, %v505_v30 }
  0x1f   : > { %698 = vmatprep.subr.bf16.mxu0 %v808_v2  ;;  %v511_v35 = vld [vmem:[%s339_s21] sm:$0xf] }
  0x20   : > { %v512_v37 = vunpack.c.l.bf16 %v511_v35  ;;  %v519_v42 = vld [vmem:[%s885_s15] sm:$0xff] }
  0x22   : > { %699 = vmatpush3.bf16.msra.mxu0 %v759_v4 }
  0x23   : > { %700 = vmatprep.subr.bf16.mxu0 %v808_v2 }
  0x26   : > { %701 = vmatpush3.bf16.msra.mxu0 %v760_v5 }
  0x27   : > { %702 = vmatprep.subr.bf16.mxu0 %v808_v2 }
  0x2a   : > { %703 = vmatpush3.bf16.msra.mxu0 %v761_v6 }
  0x2b   : > { %704 = vmatprep.subr.bf16.mxu0 %v808_v2 }
  0x2e   : > { %705 = vmatpush3.bf16.msra.mxu0 %v762_v7 }
  0x2f   : > { %706 = vmatprep.subr.bf16.mxu0 %v808_v2 }
  0x32   : > { %707 = vmatpush3.bf16.msra.mxu0 %v763_v8 }
  0x33   : > { %708 = vmatprep.subr.bf16.mxu0 %v808_v2 }
  0x36   : > { %709 = vmatpush3.bf16.msra.mxu0 %v764_v9 }
  0x39   : > { %711 = vmatmul.mubr.bf16.vlgmr.msra.gmra.mrb[0].mxu0 %v360_v10 }
 0x10c   : > { %v466_v12 = vpop.f32.mrb[0].mxu0 }
 0x10d   : > { %v467_v13 = vadd.f32 %v671_v11, %v466_v12  ;;  %v712_v14 = vpop.f32.mrb[1].mxu0 }
 0x10e   : > { %v469_v15 = vpop.f32.mrb[2].mxu0 }
 0x10f   : > { %v713_v16 = vpop.f32.mrb[3].mxu0  ;;  %v475_v17 = vsel %vm474_vm2, %v467_v13, 0.0  ;;  %v480_v18 = vmul.f32 %v467_v13, %v467_v13 }
 0x110   : > { %476 = vadd.xlane.f32.xlu0 %v475_v17 }
 0x111   : > { %v481_v19 = vsel %vm474_vm2, %v480_v18, 0.0 }
 0x114   : > { %482 = vadd.xlane.f32.xlu0 %v481_v19 }
 0x19d   : > { %v477_v20 = vpop.xlane.xlu0 %476 }
 0x19e   : > { %v479_v21 = vmul.f32 0.03125, %v477_v20 }
 0x1a0   : > { %v485_v23 = vmul.f32 %v479_v21, %v479_v21  ;;  %v487_v27 = vsub.f32 %v467_v13, %v479_v21 }
 0x1a1   : > { %v483_v22 = vpop.xlane.xlu0 %482 }
 0x1a2   : > { %v484_v24 = vmul.f32 0.03125, %v483_v22 }
 0x1a4   : > { %v486_v25 = vsub.f32 %v484_v24, %v485_v23 }
 0x1a6   : > { %v488_v26 = vadd.f32 1e-05, %v486_v25 }
 0x1a8   : > { %765 = vrsqrt.f32 %v488_v26 }
 0x1b2   : > { %v766_v28 = vpop.eup %765 }
 0x1b3   : > { %v490_v31 = vmul.f32 %v766_v28, %v487_v27 }
 0x1b5   : > { %v497_v34 = vmul.f32 %v680_v29, %v490_v31 }
 0x1b7   : > { %v504_v36 = vadd.f32 %v681_v32, %v497_v34 }
 0x1b9   : > { %v507_v38 = vadd.f32 %v506_v33, %v504_v36 }
 0x1bb   : > { %vm508_vm3 = vcmp.ge.f32.partialorder %v507_v38, 1.0 }
 0x1bc   : > { %v509_v39 = vsel %vm508_vm3, 0.0, %v507_v38  ;;  %v682_v40 = vsel %vm508_vm3, 1.0, %v808_v2 }
 0x1bd   : > { %510 = vst.msk [vmem:[#allocation2] sm:$0xff] %vm474_vm2, %v509_v39  ;;  %v515_v41 = vadd.f32 %v682_v40, %v512_v37 }
 0x1bf   : > { %v516_v43 = vpack.c.bf16 %v515_v41, %v515_v41  ;;  %v520_v44 = vmul.f32 0.5, %v515_v41 }
 0x1c1   : > { %518 = vst.msk [vmem:[%s347_s25] sm:$0xf] %vm517_vm4, %v516_v43  ;;  %v521_v45 = vadd.f32 %v520_v44, %v519_v42 }
 0x1c3   : > { %522 = vst.msk [vmem:[%s885_s15] sm:$0xff] %vm474_vm2, %v521_v45 }
 0x1c4 PF: > { %s18_s28 = sadd.s32 1, %s805_s28   ;;  %s977_s24 = smov %s797_s26 }
 0x1c5   : > { %p15_p8 = scmp.ge.s32.totalorder %s18_s28, 6   ;;  %s978_s25 = smov %s801_s27 }
 0x1c6   : > { %s979_s26 = smov %s982_s29  ;;  %s980_s27 = smov %s986_s30 }
 0x1c7   :  { %17 = sbr.rel (!%p15_p8) target bundleno = 3 (0x3), region = 93 }

// kernel: spikformer_forward.27
= control target key start
LH: loop header
LB: loop body
LE: loop exit
PB: predicated region body
PF: predicated region fallthrough
CT: control target
= control target key end

     0   :  { %v133_v0 = vmov 0.0|0.0   ;;  %vm134_vm0 = vmmov 0   ;;  %v135_v4 = vmov 0.0   ;;  %vm26_vm1 = vcmask 261120   ;;  %s177_s1 = inlined_call_operand.vmem [shape: f32[32,2], index: 1, kind: input, shape index: {}]   ;;  %s178_s0 = inlined_call_operand.vmem [shape: f32[4,32], index: 0, kind: input, shape index: {}]   ;;  %s179_s2 = inlined_call_operand.vmem [shape: f32[1,2], index: 2, kind: input, shape index: {}]   ;;  %s180_s3 = inlined_call_operand.vmem [shape: f32[4,2], index: 3, kind: output, shape index: {}]  }
   0x1   :  { %124 = vmatprep.subr.bf16.mxu0 %v133_v0  ;;  %v15_v1 = vld [vmem:[%s177_s1] sm:$0xff]  ;;  %v16_v2 = vld [vmem:[%s177_s1 + $0x8] sm:$0xff]  ;;  %v17_v3 = vld [vmem:[%s177_s1 + $0x10] sm:$0xff]  ;;  %121 = vmatprep.mubr.msk.f32.mxu0 %vm134_vm0, %v135_v4  ;;  %vm100_vm2 = vcmask 11264  }
   0x2   :  { %v125_v5 = vpack.c.bf16 %v16_v2, %v15_v1  ;;  %v18_v6 = vld [vmem:[%s177_s1 + $0x18] sm:$0xff]  ;;  %v14_v8 = vld [vmem:[%s178_s0] sm:$0xf] }
   0x3   :  { %v128_v7 = vpack.c.bf16 %v18_v6, %v17_v3  ;;  %v106_v9 = vld [vmem:[%s179_s2] ss:$0 sm:$0xff] }
   0x4   :  { %126 = vmatpush3.bf16.msra.mxu0 %v125_v5 }
   0x5   :  { %127 = vmatprep.subr.bf16.mxu0 %v133_v0 }
   0x8   :  { %129 = vmatpush3.bf16.msra.mxu0 %v128_v7 }
   0xb   :  { %122 = vmatmul.mubr.msk.f32.vlgmr.msra.gmra.mrb[0].mxu0 %vm26_vm1, %v14_v8 }
  0xde   :  { %v96_v10 = vpop.f32.mrb[0].mxu0 }
  0xdf   :  { %v97_v11 = vadd.f32 %v106_v9, %v96_v10  ;;  %v123_v12 = vpop.f32.mrb[1].mxu0 }
  0xe1   :  { %101 = vst.msk [vmem:[%s180_s3] sm:$0xf] %vm100_vm2, %v97_v11 }

// kernel: spikformer_forward.26
= control target key start
LH: loop header
LB: loop body
LE: loop exit
PB: predicated region body
PF: predicated region fallthrough
CT: control target
= control target key end

     0   :  { %s343_s12 = smov 0   ;;  %s376_s0 = inlined_call_operand.vmem [shape: bf16[32,32], index: 0, kind: input, shape index: {}]   ;;  %s377_s1 = inlined_call_operand.vmem [shape: f32[1,32], index: 1, kind: input, shape index: {}]   ;;  %s378_s2 = inlined_call_operand.vmem [shape: f32[1,32], index: 2, kind: input, shape index: {}]   ;;  %s379_s3 = inlined_call_operand.vmem [shape: f32[32,32], index: 3, kind: output, shape index: {}]  }
   0x1 LB: > { %s286_s13 = sadd.s32 4294967295, %s321_s12   ;;  %p290_p0 = scmp.ge.s32.totalorder %s321_s12, 1  ;;  %s321_s12 = sphi %s343_s12, %s13_s12  }
   0x2   : > { %p138_p1 = scmp.lt.s32.totalorder %s321_s12, 3 }
   0x4   : > { %p139_p2 = pnand %p290_p0, %p138_p1 }
   0x5   : > { %s291_s14 = sshll.u32 (!%p139_p2), %s286_s13, 1  ;;  %vm180_vm0 = vcmask (!%p139_p2), 261120   ;;  %v295_v25 = vld [vmem:[%s377_s1] ss:$0 sm:$0xff] (!%p139_p2) }
   0x6   : > { %142 = sbr.rel (%p139_p2) target bundleno = 192 (0xc0), region = 32  ;;  %p163_p3 = scmp.lt.s32.totalorder (!%p139_p2), %s291_s14, 3  ;;  %v296_v27 = vld [vmem:[%s378_s2] ss:$0 sm:$0xff] (!%p139_p2) }
   0xd   : > { %s381_s14 = smov (!%p163_p3, %s291_s14), 3 }
   0xe   : > { %s292_s15 = sshll.u32 %s381_s14, 2  ;;  %s294_s21 = sshll.u32 %s381_s14, 3 }
   0xf   : > { %s166_s18 = scalar_lea.vmem %s376_s0, %s292_s15  ;;  %s172_s26 = scalar_lea.vmem %s379_s3, %s294_s21 }
  0x10   : > { %v300_v0 = vld [vmem:[%s166_s18] sm:$0xff]  }
  0x11   : > { %v301_v1 = vunpack.c.l.bf16 %v300_v0  ;;  %v302_v2 = vunpack.c.h.bf16 %v300_v0 }
  0x13   : > { %v181_v3 = vsel %vm180_vm0, %v301_v1, 0.0  ;;  %v190_v4 = vmul.f32 %v301_v1, %v301_v1  ;;  %v191_v5 = vmul.f32 %v302_v2, %v302_v2  ;;  %v184_v7 = vsel %vm180_vm0, %v302_v2, 0.0 }
  0x14   : > { %182 = vadd.xlane.f32.xlu0 %v181_v3 }
  0x15   : > { %v192_v6 = vsel %vm180_vm0, %v190_v4, 0.0  ;;  %v195_v8 = vsel %vm180_vm0, %v191_v5, 0.0 }
  0x16   : > { %193 = vadd.xlane.f32.xlu1 %v192_v6 }
  0x18   : > { %185 = vadd.xlane.f32.xlu0 %v184_v7 }
  0x1a   : > { %196 = vadd.xlane.f32.xlu1 %v195_v8 }
  0xa1   : > { %v183_v9 = vpop.xlane.xlu0 %182 }
  0xa2   : > { %v188_v10 = vmul.f32 0.03125, %v183_v9 }
  0xa3   : > { %v194_v11 = vpop.xlane.xlu1 %193 }
  0xa4   : > { %v200_v12 = vmul.f32 %v188_v10, %v188_v10  ;;  %v198_v13 = vmul.f32 0.03125, %v194_v11  ;;  %v204_v23 = vsub.f32 %v301_v1, %v188_v10 }
  0xa5   : > { %v186_v14 = vpop.xlane.xlu0 %185 }
  0xa6   : > { %v202_v15 = vsub.f32 %v198_v13, %v200_v12  ;;  %v189_v16 = vmul.f32 0.03125, %v186_v14 }
  0xa7   : > { %v197_v17 = vpop.xlane.xlu1 %196 }
  0xa8   : > { %v206_v18 = vadd.f32 1e-05, %v202_v15  ;;  %v201_v19 = vmul.f32 %v189_v16, %v189_v16  ;;  %v199_v20 = vmul.f32 0.03125, %v197_v17  ;;  %v205_v29 = vsub.f32 %v302_v2, %v189_v16 }
  0xaa   : > { %311 = vrsqrt.f32 %v206_v18  ;;  %v203_v21 = vsub.f32 %v199_v20, %v201_v19 }
  0xac   : > { %v207_v22 = vadd.f32 1e-05, %v203_v21 }
  0xae   : > { %313 = vrsqrt.f32 %v207_v22 }
  0xb4   : > { %v312_v24 = vpop.eup %311 }
  0xb5   : > { %v210_v26 = vmul.f32 %v312_v24, %v204_v23 }
  0xb7   : > { %v218_v28 = vmul.f32 %v295_v25, %v210_v26 }
  0xb8   : > { %v314_v30 = vpop.eup %313 }
  0xb9   : > { %v226_v31 = vadd.f32 %v296_v27, %v218_v28  ;;  %v211_v32 = vmul.f32 %v314_v30, %v205_v29 }
  0xbb   : > { %228 = vst.msk [vmem:[%s172_s26] sm:$0xff] %vm180_vm0, %v226_v31  ;;  %v219_v33 = vmul.f32 %v295_v25, %v211_v32 }
  0xbd   : > { %v227_v34 = vadd.f32 %v296_v27, %v219_v33 }
  0xbf   : > { %229 = vst.msk [vmem:[%s172_s26 + $0x8] sm:$0xff] %vm180_vm0, %v227_v34 }
  0xc0 PF: > { %s13_s12 = sadd.s32 1, %s321_s12  }
  0xc1   : > { %p10_p4 = scmp.ge.s32.totalorder %s13_s12, 4  }
  0xc3   :  { %12 = sbr.rel (!%p10_p4) target bundleno = 1 (0x1), region = 62 }

</bundles_post_ra>
